<compile_context>
chip_gen: v5e
topology: v5e:2x2
jax: 0.10.0
libtpu: 0.0.40
codegen_flags: <defaults>
</compile_context>

<pallas_src>
import jax
import jax.numpy as jnp
from jax import lax
from jax.experimental import pallas as pl
from jax.experimental.pallas import tpu as pltpu

BS, SEQ = 2, 8
N = BS * SEQ                       # 16 flattened positions
CONCAT_DIM = 768
H1, H2, H3 = 256, 128, 64          # hidden_size1/2/3
NHEAD, NLAYER = 4, 4
HEAD_DIM = H2 // NHEAD             # 32
NCLASS = 7
LN_EPS = 1e-5
BN_EPS = 1e-5
NEG_INF = -1e30

# rows of the packed per-layer vector bundle `lvec` (NLAYER, 7, 1, H2)
OUTB, N1W, N1B, L1B, L2B, N2W, N2B = range(7)

assert (SEQ & (SEQ - 1)) == 0, "block-diagonal batch mask assumes SEQ is a power of two"


def _leaky_relu(x, slope=0.1):
    return jnp.where(x >= 0, x, slope * x)


def _layer_norm(x, gamma, beta):
    mean = jnp.mean(x, axis=-1, keepdims=True)
    var = jnp.mean((x - mean) ** 2, axis=-1, keepdims=True)
    return (x - mean) * lax.rsqrt(var + LN_EPS) * gamma + beta


def compound_exp_kernel(
    x_ref,                       # (N, 768) bf16 : ViT features (pre-flattened/cast in wrapper)
    fcw_ref, fcb_ref,            # feat_fc 768->256 : (768,256) bf16, (1,256) f32
    c1w_ref, c1b_ref,            # conv1  256->128 : (256,128) bf16, (1,128) f32
    inw_ref, inb_ref,            # THIS layer's qkv proj : (128,384) bf16 / (1,384) f32 (Q pre-scaled)
    ow_ref,                      # THIS layer's out_proj : (128,128) bf16
    lvec_ref,                    # THIS layer's vectors  : (7,1,128) f32 [outb,n1w,n1b,l1b,l2b,n2w,n2b]
    ffnw_ref,                    # THIS layer's FFN      : (2,128,128) bf16 [linear1, linear2]
    hw_ref, hb_ref,              # folded head Linear->BN->Linear : (128,7) bf16, (1,7) f32
    o_ref,                       # (BS, 7) f32 output (constant block across the layer grid)
    h_ref,                       # VMEM scratch (N, 128) f32, carried across layer steps
):
    l = pl.program_id(0)

    @pl.when(l == 0)
    def _():
        # feat_fc (1x1 conv == per-position matmul) + LeakyReLU(0.1), then conv1
        t = jnp.dot(x_ref[...], fcw_ref[...],
                    preferred_element_type=jnp.float32) + fcb_ref[...]
        t = _leaky_relu(t)
        t = jnp.dot(t.astype(jnp.bfloat16), c1w_ref[...],
                    preferred_element_type=jnp.float32) + c1b_ref[...]
        h_ref[...] = t

    h = h_ref[...]                                                   # (N, 128) f32

    # static block-diagonal mask: position i attends to j iff same batch element
    # (SEQ is a power of two -> batch id == row index with low bits cleared).
    ridx = lax.broadcasted_iota(jnp.int32, (N, N), 0)
    cidx = lax.broadcasted_iota(jnp.int32, (N, N), 1)
    nb = ~(SEQ - 1)
    same_batch = (ridx & nb) == (cidx & nb)

    # ----- one post-norm nn.TransformerEncoderLayer (inference: dropout = identity) -----
    qkv = jnp.dot(h.astype(jnp.bfloat16), inw_ref[...],
                  preferred_element_type=jnp.float32) + inb_ref[...]  # (N, 384) f32

    ctx = []
    for hh in range(NHEAD):
        qh = qkv[:, hh * HEAD_DIM:(hh + 1) * HEAD_DIM]                          # (N,32)
        kh = qkv[:, H2 + hh * HEAD_DIM:H2 + (hh + 1) * HEAD_DIM]
        vh = qkv[:, 2 * H2 + hh * HEAD_DIM:2 * H2 + (hh + 1) * HEAD_DIM]
        s = lax.dot_general(qh, kh, (((1,), (1,)), ((), ())),
                            preferred_element_type=jnp.float32)                 # (N,N)
        s = jnp.where(same_batch, s, NEG_INF)
        s = s - jnp.max(s, axis=-1, keepdims=True)
        p = jnp.exp(s)
        p = p * pl.reciprocal(jnp.sum(p, axis=-1, keepdims=True), approx=True)
        ctx.append(jnp.dot(p, vh, preferred_element_type=jnp.float32))          # (N,32)
    # heads lane-concatenated -> single out_proj matmul per layer
    ctx_all = jnp.concatenate(ctx, axis=-1)                                     # (N,128)
    attn = jnp.dot(ctx_all.astype(jnp.bfloat16), ow_ref[...],
                   preferred_element_type=jnp.float32) + lvec_ref[OUTB]

    h = _layer_norm(h + attn, lvec_ref[N1W], lvec_ref[N1B])

    ff = jnp.dot(h.astype(jnp.bfloat16), ffnw_ref[0],
                 preferred_element_type=jnp.float32) + lvec_ref[L1B]
    ff = jnp.maximum(ff, 0.0)                                                   # relu
    ff = jnp.dot(ff.astype(jnp.bfloat16), ffnw_ref[1],
                 preferred_element_type=jnp.float32) + lvec_ref[L2B]
    h = _layer_norm(h + ff, lvec_ref[N2W], lvec_ref[N2B])

    h_ref[...] = h

    @pl.when(l == pl.num_programs(0) - 1)
    def _():
        # forward(): out.view(bs, seq, -1)[:, 0, :] -> only seq position 0 of each batch
        rows = jnp.concatenate([h[b * SEQ:b * SEQ + 1, :] for b in range(BS)], axis=0)
        y = jnp.dot(rows.astype(jnp.bfloat16), hw_ref[...],
                    preferred_element_type=jnp.float32) + hb_ref[...]           # (BS,7)
        o_ref[...] = y


KPARAM_ORDER = ["fcw", "fcb", "c1w", "c1b", "inw", "inb", "ow", "lvec", "ffnw", "hw", "hb"]


def compound_exp_forward(vid, kparams):
    # wrapper-side flatten + bf16 cast (halves activation DMA, no in-kernel reshape/cast)
    x = vid.reshape(BS * SEQ, CONCAT_DIM).astype(jnp.bfloat16)
    inputs = [x] + [kparams[k] for k in KPARAM_ORDER]

    const2 = lambda l: (0, 0)             # fetched once, resident across all layer steps
    per_layer3 = lambda l: (l, 0, 0)      # streamed: layer l's block fetched for step l
    per_layer4 = lambda l: (l, 0, 0, 0)

    in_specs = [
        pl.BlockSpec((N, CONCAT_DIM), const2),          # x     (used at step 0)
        pl.BlockSpec((CONCAT_DIM, H1), const2),         # fcw
        pl.BlockSpec((1, H1), const2),                  # fcb
        pl.BlockSpec((H1, H2), const2),                 # c1w
        pl.BlockSpec((1, H2), const2),                  # c1b
        pl.BlockSpec((None, H2, 3 * H2), per_layer3),   # inw   (layer streamed)
        pl.BlockSpec((None, 1, 3 * H2), per_layer3),    # inb
        pl.BlockSpec((None, H2, H2), per_layer3),       # ow
        pl.BlockSpec((None, 7, 1, H2), per_layer4),     # lvec
        pl.BlockSpec((None, 2, H2, H2), per_layer4),    # ffnw
        pl.BlockSpec((H2, NCLASS), const2),             # hw    (used at last step)
        pl.BlockSpec((1, NCLASS), const2),              # hb
    ]

    return pl.pallas_call(
        compound_exp_kernel,
        out_shape=jax.ShapeDtypeStruct((BS, NCLASS), jnp.float32),
        grid_spec=pltpu.PrefetchScalarGridSpec(
            num_scalar_prefetch=0,
            grid=(NLAYER,),
            in_specs=in_specs,
            out_specs=pl.BlockSpec((BS, NCLASS), const2),
            scratch_shapes=[pltpu.VMEM((N, H2), jnp.float32)],   # carried hidden state
        ),
        compiler_params=pltpu.CompilerParams(dimension_semantics=("arbitrary",)),
        # NOTE: no vmem_limit_bytes — total live buffers ~1.5 MiB, well under the default
        # scoped limit on every generation (v7x only has 64 MiB total VMEM).
    )(*inputs)


def prepare_kernel_params(p):
    """Host-side folding / packing of the natural ((in, out)-transposed PyTorch)
    parameters into the packed bf16 form the kernel consumes.  All transforms are
    exact rewrites of the eval-mode forward, up to fp rounding."""
    f32, bf16 = jnp.float32, jnp.bfloat16
    kp = {}
    kp["fcw"] = p["fcw"].astype(bf16)
    kp["fcb"] = p["fcb"].astype(f32)
    kp["c1w"] = p["c1w"].astype(bf16)
    kp["c1b"] = p["c1b"].astype(f32)

    # fold the attention 1/sqrt(head_dim) scale into the Q columns of in_proj
    scale = 1.0 / (HEAD_DIM ** 0.5)
    qscale = jnp.concatenate(
        [jnp.full((1, H2), scale, f32), jnp.ones((1, 2 * H2), f32)], axis=-1)   # (1,384)
    kp["inw"] = (p["inw"] * qscale).astype(bf16)                                # (L,128,384)
    kp["inb"] = (p["inb"] * qscale).astype(f32)                                 # (L,1,384)

    kp["ow"] = p["outw"].astype(bf16)                                           # (L,128,128)

    # pack the per-layer (1, 128) vectors: [outb, n1w, n1b, l1b, l2b, n2w, n2b]
    kp["lvec"] = jnp.stack(
        [p["outb"], p["n1w"], p["n1b"], p["l1b"], p["l2b"], p["n2w"], p["n2b"]],
        axis=1).astype(f32)                                                     # (L,7,1,128)

    kp["ffnw"] = jnp.stack([p["l1w"], p["l2w"]], axis=1).astype(bf16)           # (L,2,128,128)

    # fold BatchNorm1d (eval, running stats) into Linear(128,64), then compose the
    # whole affine head Linear->BN->Linear into one (128, 7) affine map.
    inv = 1.0 / jnp.sqrt(p["bnv"] + BN_EPS)                                     # (1,64)
    sbn = p["bng"] * inv
    tbn = p["bnb"] - p["bnm"] * sbn
    kp["hw"] = ((p["hw1"] * sbn) @ p["hw2"]).astype(bf16)                       # (128,7)
    kp["hb"] = ((p["hb1"] * sbn + tbn) @ p["hw2"] + p["hb2"]).astype(f32)       # (1,7)
    return kp


def reference_forward(vid, kp):
    """Pure-JAX eval-mode reference on the same packed params (checks the kernel math)."""
    f32, bf16 = jnp.float32, jnp.bfloat16
    x = vid.reshape(N, CONCAT_DIM)
    h = jnp.dot(x.astype(bf16), kp["fcw"], preferred_element_type=f32) + kp["fcb"]
    h = jnp.where(h >= 0, h, 0.1 * h)
    h = jnp.dot(h.astype(bf16), kp["c1w"], preferred_element_type=f32) + kp["c1b"]

    ridx = lax.broadcasted_iota(jnp.int32, (N, N), 0)
    cidx = lax.broadcasted_iota(jnp.int32, (N, N), 1)
    same_batch = (ridx & ~(SEQ - 1)) == (cidx & ~(SEQ - 1))

    for l in range(NLAYER):
        qkv = jnp.dot(h.astype(bf16), kp["inw"][l], preferred_element_type=f32) + kp["inb"][l]
        ctx = []
        for hh in range(NHEAD):
            qh = qkv[:, hh * HEAD_DIM:(hh + 1) * HEAD_DIM]
            kh = qkv[:, H2 + hh * HEAD_DIM:H2 + (hh + 1) * HEAD_DIM]
            vh = qkv[:, 2 * H2 + hh * HEAD_DIM:2 * H2 + (hh + 1) * HEAD_DIM]
            s = jnp.where(same_batch, qh @ kh.T, NEG_INF)
            ctx.append(jax.nn.softmax(s, axis=-1) @ vh)
        attn = jnp.dot(jnp.concatenate(ctx, -1).astype(bf16), kp["ow"][l],
                       preferred_element_type=f32) + kp["lvec"][l, OUTB]
        h = _layer_norm(h + attn, kp["lvec"][l, N1W], kp["lvec"][l, N1B])
        ff = jnp.dot(h.astype(bf16), kp["ffnw"][l, 0], preferred_element_type=f32) + kp["lvec"][l, L1B]
        ff = jnp.maximum(ff, 0.0)
        ff = jnp.dot(ff.astype(bf16), kp["ffnw"][l, 1], preferred_element_type=f32) + kp["lvec"][l, L2B]
        h = _layer_norm(h + ff, kp["lvec"][l, N2W], kp["lvec"][l, N2B])

    rows = h.reshape(BS, SEQ, H2)[:, 0, :]
    return jnp.dot(rows.astype(bf16), kp["hw"], preferred_element_type=f32) + kp["hb"]


def init_params(key):
    """Random parameters in the natural layout (PyTorch weights transposed to (in, out))."""
    ks = iter(jax.random.split(key, 32))

    def w(shape, scale=0.05):
        return (scale * jax.random.normal(next(ks), shape)).astype(jnp.float32)

    p = {}
    p["fcw"] = w((CONCAT_DIM, H1))
    p["fcb"] = w((1, H1))
    p["c1w"] = w((H1, H2))
    p["c1b"] = w((1, H2))
    p["inw"] = w((NLAYER, H2, 3 * H2))          # in_proj_weight.T, columns [Q|K|V]
    p["inb"] = w((NLAYER, 1, 3 * H2))
    p["outw"] = w((NLAYER, H2, H2))
    p["outb"] = w((NLAYER, 1, H2))
    p["n1w"] = jnp.ones((NLAYER, 1, H2), jnp.float32) + w((NLAYER, 1, H2), 0.01)
    p["n1b"] = w((NLAYER, 1, H2), 0.01)
    p["l1w"] = w((NLAYER, H2, H2))
    p["l1b"] = w((NLAYER, 1, H2))
    p["l2w"] = w((NLAYER, H2, H2))
    p["l2b"] = w((NLAYER, 1, H2))
    p["n2w"] = jnp.ones((NLAYER, 1, H2), jnp.float32) + w((NLAYER, 1, H2), 0.01)
    p["n2b"] = w((NLAYER, 1, H2), 0.01)
    p["hw1"] = w((H2, H3))
    p["hb1"] = w((1, H3))
    p["bng"] = jnp.ones((1, H3), jnp.float32) + w((1, H3), 0.01)
    p["bnb"] = w((1, H3), 0.01)
    p["bnm"] = w((1, H3), 0.01)
    p["bnv"] = jnp.ones((1, H3), jnp.float32) + jnp.abs(w((1, H3), 0.1))
    p["hw2"] = w((H3, NCLASS))
    p["hb2"] = w((1, NCLASS))
    return p


if __name__ == "__main__":
    key = jax.random.PRNGKey(0)
    pkey, vkey, akey = jax.random.split(key, 3)
    params = init_params(pkey)
    kparams = prepare_kernel_params(params)

    # TODO(synk): the frozen ViT-MAE extractor (models_vit + external checkpoint) is not
    # implementable in-kernel; `vid` below stands for its (bs, seq, 768) output features.
    vid = jax.random.normal(vkey, (BS, SEQ, CONCAT_DIM), dtype=jnp.float32)
    aud = jax.random.normal(akey, (BS, SEQ, 32), dtype=jnp.float32)  # unused: the
    # reference CompondEXP.forward never reads `aud`.

    out = compound_exp_forward(vid, kparams)
    jax.block_until_ready(out)
    assert out.shape == (BS, NCLASS) and out.dtype == jnp.float32
    assert bool(jnp.all(jnp.isfinite(out)))

    ref = reference_forward(vid, kparams)
    max_diff = float(jnp.max(jnp.abs(out - ref)))
    assert max_diff < 5e-2, f"kernel/reference mismatch: max|diff|={max_diff}"

    print("KERNEL_OK")
</pallas_src>

<mosaic_0001>
module attributes {stable_mosaic.version = 11 : i64} {
  func.func @compound_exp_kernel(%arg0: i32, %arg1: memref<16x768xbf16, #tpu.memory_space<vmem>>, %arg2: memref<768x256xbf16, #tpu.memory_space<vmem>>, %arg3: memref<1x256xf32, #tpu.memory_space<vmem>>, %arg4: memref<256x128xbf16, #tpu.memory_space<vmem>>, %arg5: memref<1x128xf32, #tpu.memory_space<vmem>>, %arg6: memref<1x128x384xbf16, #tpu.memory_space<vmem>>, %arg7: memref<1x1x384xf32, #tpu.memory_space<vmem>>, %arg8: memref<1x128x128xbf16, #tpu.memory_space<vmem>>, %arg9: memref<1x7x1x128xf32, #tpu.memory_space<vmem>>, %arg10: memref<1x2x128x128xbf16, #tpu.memory_space<vmem>>, %arg11: memref<128x7xbf16, #tpu.memory_space<vmem>>, %arg12: memref<1x7xf32, #tpu.memory_space<vmem>>, %arg13: memref<2x7xf32, #tpu.memory_space<vmem>>, %arg14: memref<16x128xf32, #tpu.memory_space<vmem>>) attributes {dimension_semantics = [#tpu.dimension_semantics<arbitrary>], iteration_bounds = array<i64: 4>, scalar_prefetch = 0 : i64, scratch_operands = 1 : i64, tpu.core_type = #tpu.core_type<tc>, window_params = [{pipeline_mode = #tpu.pipeline_mode<synchronous>, transform_indices = @transform_0, window_bounds = array<i64: 16, 768>}, {pipeline_mode = #tpu.pipeline_mode<synchronous>, transform_indices = @transform_1, window_bounds = array<i64: 768, 256>}, {pipeline_mode = #tpu.pipeline_mode<synchronous>, transform_indices = @transform_2, window_bounds = array<i64: 1, 256>}, {pipeline_mode = #tpu.pipeline_mode<synchronous>, transform_indices = @transform_3, window_bounds = array<i64: 256, 128>}, {pipeline_mode = #tpu.pipeline_mode<synchronous>, transform_indices = @transform_4, window_bounds = array<i64: 1, 128>}, {transform_indices = @transform_5, window_bounds = array<i64: 1, 128, 384>}, {transform_indices = @transform_6, window_bounds = array<i64: 1, 1, 384>}, {transform_indices = @transform_7, window_bounds = array<i64: 1, 128, 128>}, {transform_indices = @transform_8, window_bounds = array<i64: 1, 7, 1, 128>}, {transform_indices = @transform_9, window_bounds = array<i64: 1, 2, 128, 128>}, {pipeline_mode = #tpu.pipeline_mode<synchronous>, transform_indices = @transform_10, window_bounds = array<i64: 128, 7>}, {pipeline_mode = #tpu.pipeline_mode<synchronous>, transform_indices = @transform_11, window_bounds = array<i64: 1, 7>}, {pipeline_mode = #tpu.pipeline_mode<synchronous>, transform_indices = @transform_12, window_bounds = array<i64: 2, 7>}]} {
    %c0_i32 = arith.constant 0 : i32
    %0 = arith.cmpi eq, %arg0, %c0_i32 : i32
    %1 = arith.extui %0 : i1 to i32
    %c0_i32_0 = arith.constant 0 : i32
    %2 = arith.cmpi ne, %1, %c0_i32_0 : i32
    scf.if %2 {
      %c0_79 = arith.constant 0 : index
      %c0_80 = arith.constant 0 : index
      %172 = vector.load %arg1[%c0_79, %c0_80] : memref<16x768xbf16, #tpu.memory_space<vmem>>, vector<16x768xbf16>
      %c0_81 = arith.constant 0 : index
      %c0_82 = arith.constant 0 : index
      %173 = vector.load %arg2[%c0_81, %c0_82] : memref<768x256xbf16, #tpu.memory_space<vmem>>, vector<768x256xbf16>
      %cst_83 = arith.constant dense<0.000000e+00> : vector<16x256xf32>
      %174 = tpu.matmul %172, %173, %cst_83 {dimension_numbers = #tpu.dot_dimension_numbers<[1], [0], [0], [1], [0, 0, 1, 1], [], []>} : vector<16x768xbf16>, vector<768x256xbf16>, vector<16x256xf32> -> vector<16x256xf32>
      %c0_84 = arith.constant 0 : index
      %c0_85 = arith.constant 0 : index
      %175 = vector.load %arg3[%c0_84, %c0_85] : memref<1x256xf32, #tpu.memory_space<vmem>>, vector<1x256xf32>
      %176 = vector.broadcast %175 : vector<1x256xf32> to vector<16x256xf32>
      %177 = arith.addf %174, %176 : vector<16x256xf32>
      %cst_86 = arith.constant 0.000000e+00 : f32
      %178 = vector.broadcast %cst_86 : f32 to vector<16x256xf32>
      %179 = arith.cmpf oge, %177, %178 : vector<16x256xf32>
      %cst_87 = arith.constant 1.000000e-01 : f32
      %180 = vector.broadcast %cst_87 : f32 to vector<16x256xf32>
      %181 = arith.mulf %180, %177 : vector<16x256xf32>
      %182 = arith.select %179, %177, %181 : vector<16x256xi1>, vector<16x256xf32>
      %183 = arith.truncf %182 : vector<16x256xf32> to vector<16x256xbf16>
      %c0_88 = arith.constant 0 : index
      %c0_89 = arith.constant 0 : index
      %184 = vector.load %arg4[%c0_88, %c0_89] : memref<256x128xbf16, #tpu.memory_space<vmem>>, vector<256x128xbf16>
      %cst_90 = arith.constant dense<0.000000e+00> : vector<16x128xf32>
      %185 = tpu.matmul %183, %184, %cst_90 {dimension_numbers = #tpu.dot_dimension_numbers<[1], [0], [0], [1], [0, 0, 1, 1], [], []>} : vector<16x256xbf16>, vector<256x128xbf16>, vector<16x128xf32> -> vector<16x128xf32>
      %c0_91 = arith.constant 0 : index
      %c0_92 = arith.constant 0 : index
      %186 = vector.load %arg5[%c0_91, %c0_92] : memref<1x128xf32, #tpu.memory_space<vmem>>, vector<1x128xf32>
      %187 = vector.broadcast %186 : vector<1x128xf32> to vector<16x128xf32>
      %188 = arith.addf %185, %187 : vector<16x128xf32>
      %c0_93 = arith.constant 0 : index
      %c0_94 = arith.constant 0 : index
      %189 = vector.load %arg14[%c0_93, %c0_94] : memref<16x128xf32, #tpu.memory_space<vmem>>, vector<16x128xf32>
      tpu.vector_store %arg14[%c0_93, %c0_94], %188 {strides = array<i32>} : memref<16x128xf32, #tpu.memory_space<vmem>>, vector<16x128xf32>,
    } else {
    }
    %c0 = arith.constant 0 : index
    %c0_1 = arith.constant 0 : index
    %3 = vector.load %arg14[%c0, %c0_1] : memref<16x128xf32, #tpu.memory_space<vmem>>, vector<16x128xf32>
    %4 = tpu.iota {dimensions = array<i32: 0>} : vector<16x16xi32>
    %5 = tpu.iota {dimensions = array<i32: 1>} : vector<16x16xi32>
    %c-8_i32 = arith.constant -8 : i32
    %6 = vector.broadcast %c-8_i32 : i32 to vector<16x16xi32>
    %7 = arith.andi %4, %6 : vector<16x16xi32>
    %c-8_i32_2 = arith.constant -8 : i32
    %8 = vector.broadcast %c-8_i32_2 : i32 to vector<16x16xi32>
    %9 = arith.andi %5, %8 : vector<16x16xi32>
    %10 = arith.cmpi eq, %7, %9 : vector<16x16xi32>
    %11 = arith.truncf %3 : vector<16x128xf32> to vector<16x128xbf16>
    %c0_3 = arith.constant 0 : index
    %c0_4 = arith.constant 0 : index
    %c0_5 = arith.constant 0 : index
    %12 = vector.load %arg6[%c0_3, %c0_4, %c0_5] : memref<1x128x384xbf16, #tpu.memory_space<vmem>>, vector<1x128x384xbf16>
    %13 = vector.shape_cast %12 : vector<1x128x384xbf16> to vector<128x384xbf16>
    %cst = arith.constant dense<0.000000e+00> : vector<16x384xf32>
    %14 = tpu.matmul %11, %13, %cst {dimension_numbers = #tpu.dot_dimension_numbers<[1], [0], [0], [1], [0, 0, 1, 1], [], []>} : vector<16x128xbf16>, vector<128x384xbf16>, vector<16x384xf32> -> vector<16x384xf32>
    %c0_6 = arith.constant 0 : index
    %c0_7 = arith.constant 0 : index
    %c0_8 = arith.constant 0 : index
    %15 = vector.load %arg7[%c0_6, %c0_7, %c0_8] : memref<1x1x384xf32, #tpu.memory_space<vmem>>, vector<1x1x384xf32>
    %16 = vector.shape_cast %15 : vector<1x1x384xf32> to vector<1x384xf32>
    %17 = vector.broadcast %16 : vector<1x384xf32> to vector<16x384xf32>
    %18 = arith.addf %14, %17 : vector<16x384xf32>
    %19 = vector.extract_strided_slice %18 {offsets = [0, 0], sizes = [16, 32], strides = [1, 1]} : vector<16x384xf32> to vector<16x32xf32>
    %20 = vector.extract_strided_slice %18 {offsets = [0, 128], sizes = [16, 32], strides = [1, 1]} : vector<16x384xf32> to vector<16x32xf32>
    %21 = vector.extract_strided_slice %18 {offsets = [0, 256], sizes = [16, 32], strides = [1, 1]} : vector<16x384xf32> to vector<16x32xf32>
    %cst_9 = arith.constant dense<0.000000e+00> : vector<16x16xf32>
    %22 = tpu.matmul %19, %20, %cst_9 {dimension_numbers = #tpu.dot_dimension_numbers<[1], [1], [0], [0], [0, 0, 1, 0], [], []>} : vector<16x32xf32>, vector<16x32xf32>, vector<16x16xf32> -> vector<16x16xf32>
    %cst_10 = arith.constant -1.000000e+30 : f32
    %23 = vector.broadcast %cst_10 : f32 to vector<16x16xf32>
    %24 = arith.select %10, %22, %23 : vector<16x16xi1>, vector<16x16xf32>
    %cst_11 = arith.constant dense<0xFF800000> : vector<16xf32>
    %25 = vector.multi_reduction <maximumf>, %24, %cst_11 [1] : vector<16x16xf32> to vector<16xf32>
    %26 = vector.shape_cast %25 : vector<16xf32> to vector<16x1xf32>
    %27 = vector.broadcast %26 : vector<16x1xf32> to vector<16x16xf32>
    %28 = arith.subf %24, %27 : vector<16x16xf32>
    %29 = math.exp %28 : vector<16x16xf32>
    %cst_12 = arith.constant dense<0.000000e+00> : vector<16xf32>
    %30 = vector.multi_reduction <add>, %29, %cst_12 [1] : vector<16x16xf32> to vector<16xf32>
    %31 = vector.shape_cast %30 : vector<16xf32> to vector<16x1xf32>
    %32 = tpu.reciprocal %31 {approx = true} : vector<16x1xf32> -> vector<16x1xf32>
    %33 = vector.broadcast %32 : vector<16x1xf32> to vector<16x16xf32>
    %34 = arith.mulf %29, %33 : vector<16x16xf32>
    %cst_13 = arith.constant dense<0.000000e+00> : vector<16x32xf32>
    %35 = tpu.matmul %34, %21, %cst_13 {dimension_numbers = #tpu.dot_dimension_numbers<[1], [0], [0], [1], [0, 0, 1, 1], [], []>} : vector<16x16xf32>, vector<16x32xf32>, vector<16x32xf32> -> vector<16x32xf32>
    %36 = vector.extract_strided_slice %18 {offsets = [0, 32], sizes = [16, 32], strides = [1, 1]} : vector<16x384xf32> to vector<16x32xf32>
    %37 = vector.extract_strided_slice %18 {offsets = [0, 160], sizes = [16, 32], strides = [1, 1]} : vector<16x384xf32> to vector<16x32xf32>
    %38 = vector.extract_strided_slice %18 {offsets = [0, 288], sizes = [16, 32], strides = [1, 1]} : vector<16x384xf32> to vector<16x32xf32>
    %cst_14 = arith.constant dense<0.000000e+00> : vector<16x16xf32>
    %39 = tpu.matmul %36, %37, %cst_14 {dimension_numbers = #tpu.dot_dimension_numbers<[1], [1], [0], [0], [0, 0, 1, 0], [], []>} : vector<16x32xf32>, vector<16x32xf32>, vector<16x16xf32> -> vector<16x16xf32>
    %cst_15 = arith.constant -1.000000e+30 : f32
    %40 = vector.broadcast %cst_15 : f32 to vector<16x16xf32>
    %41 = arith.select %10, %39, %40 : vector<16x16xi1>, vector<16x16xf32>
    %cst_16 = arith.constant dense<0xFF800000> : vector<16xf32>
    %42 = vector.multi_reduction <maximumf>, %41, %cst_16 [1] : vector<16x16xf32> to vector<16xf32>
    %43 = vector.shape_cast %42 : vector<16xf32> to vector<16x1xf32>
    %44 = vector.broadcast %43 : vector<16x1xf32> to vector<16x16xf32>
    %45 = arith.subf %41, %44 : vector<16x16xf32>
    %46 = math.exp %45 : vector<16x16xf32>
    %cst_17 = arith.constant dense<0.000000e+00> : vector<16xf32>
    %47 = vector.multi_reduction <add>, %46, %cst_17 [1] : vector<16x16xf32> to vector<16xf32>
    %48 = vector.shape_cast %47 : vector<16xf32> to vector<16x1xf32>
    %49 = tpu.reciprocal %48 {approx = true} : vector<16x1xf32> -> vector<16x1xf32>
    %50 = vector.broadcast %49 : vector<16x1xf32> to vector<16x16xf32>
    %51 = arith.mulf %46, %50 : vector<16x16xf32>
    %cst_18 = arith.constant dense<0.000000e+00> : vector<16x32xf32>
    %52 = tpu.matmul %51, %38, %cst_18 {dimension_numbers = #tpu.dot_dimension_numbers<[1], [0], [0], [1], [0, 0, 1, 1], [], []>} : vector<16x16xf32>, vector<16x32xf32>, vector<16x32xf32> -> vector<16x32xf32>
    %53 = vector.extract_strided_slice %18 {offsets = [0, 64], sizes = [16, 32], strides = [1, 1]} : vector<16x384xf32> to vector<16x32xf32>
    %54 = vector.extract_strided_slice %18 {offsets = [0, 192], sizes = [16, 32], strides = [1, 1]} : vector<16x384xf32> to vector<16x32xf32>
    %55 = vector.extract_strided_slice %18 {offsets = [0, 320], sizes = [16, 32], strides = [1, 1]} : vector<16x384xf32> to vector<16x32xf32>
    %cst_19 = arith.constant dense<0.000000e+00> : vector<16x16xf32>
    %56 = tpu.matmul %53, %54, %cst_19 {dimension_numbers = #tpu.dot_dimension_numbers<[1], [1], [0], [0], [0, 0, 1, 0], [], []>} : vector<16x32xf32>, vector<16x32xf32>, vector<16x16xf32> -> vector<16x16xf32>
    %cst_20 = arith.constant -1.000000e+30 : f32
    %57 = vector.broadcast %cst_20 : f32 to vector<16x16xf32>
    %58 = arith.select %10, %56, %57 : vector<16x16xi1>, vector<16x16xf32>
    %cst_21 = arith.constant dense<0xFF800000> : vector<16xf32>
    %59 = vector.multi_reduction <maximumf>, %58, %cst_21 [1] : vector<16x16xf32> to vector<16xf32>
    %60 = vector.shape_cast %59 : vector<16xf32> to vector<16x1xf32>
    %61 = vector.broadcast %60 : vector<16x1xf32> to vector<16x16xf32>
    %62 = arith.subf %58, %61 : vector<16x16xf32>
    %63 = math.exp %62 : vector<16x16xf32>
    %cst_22 = arith.constant dense<0.000000e+00> : vector<16xf32>
    %64 = vector.multi_reduction <add>, %63, %cst_22 [1] : vector<16x16xf32> to vector<16xf32>
    %65 = vector.shape_cast %64 : vector<16xf32> to vector<16x1xf32>
    %66 = tpu.reciprocal %65 {approx = true} : vector<16x1xf32> -> vector<16x1xf32>
    %67 = vector.broadcast %66 : vector<16x1xf32> to vector<16x16xf32>
    %68 = arith.mulf %63, %67 : vector<16x16xf32>
    %cst_23 = arith.constant dense<0.000000e+00> : vector<16x32xf32>
    %69 = tpu.matmul %68, %55, %cst_23 {dimension_numbers = #tpu.dot_dimension_numbers<[1], [0], [0], [1], [0, 0, 1, 1], [], []>} : vector<16x16xf32>, vector<16x32xf32>, vector<16x32xf32> -> vector<16x32xf32>
    %70 = vector.extract_strided_slice %18 {offsets = [0, 96], sizes = [16, 32], strides = [1, 1]} : vector<16x384xf32> to vector<16x32xf32>
    %71 = vector.extract_strided_slice %18 {offsets = [0, 224], sizes = [16, 32], strides = [1, 1]} : vector<16x384xf32> to vector<16x32xf32>
    %72 = vector.extract_strided_slice %18 {offsets = [0, 352], sizes = [16, 32], strides = [1, 1]} : vector<16x384xf32> to vector<16x32xf32>
    %cst_24 = arith.constant dense<0.000000e+00> : vector<16x16xf32>
    %73 = tpu.matmul %70, %71, %cst_24 {dimension_numbers = #tpu.dot_dimension_numbers<[1], [1], [0], [0], [0, 0, 1, 0], [], []>} : vector<16x32xf32>, vector<16x32xf32>, vector<16x16xf32> -> vector<16x16xf32>
    %cst_25 = arith.constant -1.000000e+30 : f32
    %74 = vector.broadcast %cst_25 : f32 to vector<16x16xf32>
    %75 = arith.select %10, %73, %74 : vector<16x16xi1>, vector<16x16xf32>
    %cst_26 = arith.constant dense<0xFF800000> : vector<16xf32>
    %76 = vector.multi_reduction <maximumf>, %75, %cst_26 [1] : vector<16x16xf32> to vector<16xf32>
    %77 = vector.shape_cast %76 : vector<16xf32> to vector<16x1xf32>
    %78 = vector.broadcast %77 : vector<16x1xf32> to vector<16x16xf32>
    %79 = arith.subf %75, %78 : vector<16x16xf32>
    %80 = math.exp %79 : vector<16x16xf32>
    %cst_27 = arith.constant dense<0.000000e+00> : vector<16xf32>
    %81 = vector.multi_reduction <add>, %80, %cst_27 [1] : vector<16x16xf32> to vector<16xf32>
    %82 = vector.shape_cast %81 : vector<16xf32> to vector<16x1xf32>
    %83 = tpu.reciprocal %82 {approx = true} : vector<16x1xf32> -> vector<16x1xf32>
    %84 = vector.broadcast %83 : vector<16x1xf32> to vector<16x16xf32>
    %85 = arith.mulf %80, %84 : vector<16x16xf32>
    %cst_28 = arith.constant dense<0.000000e+00> : vector<16x32xf32>
    %86 = tpu.matmul %85, %72, %cst_28 {dimension_numbers = #tpu.dot_dimension_numbers<[1], [0], [0], [1], [0, 0, 1, 1], [], []>} : vector<16x16xf32>, vector<16x32xf32>, vector<16x32xf32> -> vector<16x32xf32>
    %87 = tpu.concatenate %35, %52, %69, %86 in 1 : vector<16x32xf32>, vector<16x32xf32>, vector<16x32xf32>, vector<16x32xf32> -> vector<16x128xf32>
    %88 = arith.truncf %87 : vector<16x128xf32> to vector<16x128xbf16>
    %c0_29 = arith.constant 0 : index
    %c0_30 = arith.constant 0 : index
    %c0_31 = arith.constant 0 : index
    %89 = vector.load %arg8[%c0_29, %c0_30, %c0_31] : memref<1x128x128xbf16, #tpu.memory_space<vmem>>, vector<1x128x128xbf16>
    %90 = vector.shape_cast %89 : vector<1x128x128xbf16> to vector<128x128xbf16>
    %cst_32 = arith.constant dense<0.000000e+00> : vector<16x128xf32>
    %91 = tpu.matmul %88, %90, %cst_32 {dimension_numbers = #tpu.dot_dimension_numbers<[1], [0], [0], [1], [0, 0, 1, 1], [], []>} : vector<16x128xbf16>, vector<128x128xbf16>, vector<16x128xf32> -> vector<16x128xf32>
    %c0_33 = arith.constant 0 : index
    %c0_34 = arith.constant 0 : index
    %c0_35 = arith.constant 0 : index
    %c0_36 = arith.constant 0 : index
    %92 = vector.load %arg9[%c0_33, %c0_34, %c0_35, %c0_36] : memref<1x7x1x128xf32, #tpu.memory_space<vmem>>, vector<1x1x1x128xf32>
    %93 = vector.shape_cast %92 : vector<1x1x1x128xf32> to vector<1x128xf32>
    %94 = vector.broadcast %93 : vector<1x128xf32> to vector<16x128xf32>
    %95 = arith.addf %91, %94 : vector<16x128xf32>
    %96 = arith.addf %3, %95 : vector<16x128xf32>
    %c0_37 = arith.constant 0 : index
    %c1 = arith.constant 1 : index
    %c0_38 = arith.constant 0 : index
    %c0_39 = arith.constant 0 : index
    %97 = vector.load %arg9[%c0_37, %c1, %c0_38, %c0_39] : memref<1x7x1x128xf32, #tpu.memory_space<vmem>>, vector<1x1x1x128xf32>
    %98 = vector.shape_cast %97 : vector<1x1x1x128xf32> to vector<1x128xf32>
    %c0_40 = arith.constant 0 : index
    %c2 = arith.constant 2 : index
    %c0_41 = arith.constant 0 : index
    %c0_42 = arith.constant 0 : index
    %99 = vector.load %arg9[%c0_40, %c2, %c0_41, %c0_42] : memref<1x7x1x128xf32, #tpu.memory_space<vmem>>, vector<1x1x1x128xf32>
    %100 = vector.shape_cast %99 : vector<1x1x1x128xf32> to vector<1x128xf32>
    %cst_43 = arith.constant dense<0.000000e+00> : vector<16xf32>
    %101 = vector.multi_reduction <add>, %96, %cst_43 [1] : vector<16x128xf32> to vector<16xf32>
    %102 = vector.shape_cast %101 : vector<16xf32> to vector<16x1xf32>
    %cst_44 = arith.constant 1.280000e+02 : f32
    %103 = vector.broadcast %cst_44 : f32 to vector<16x1xf32>
    %104 = arith.divf %102, %103 : vector<16x1xf32>
    %105 = vector.broadcast %104 : vector<16x1xf32> to vector<16x128xf32>
    %106 = arith.subf %96, %105 : vector<16x128xf32>
    %107 = arith.mulf %106, %106 : vector<16x128xf32>
    %cst_45 = arith.constant dense<0.000000e+00> : vector<16xf32>
    %108 = vector.multi_reduction <add>, %107, %cst_45 [1] : vector<16x128xf32> to vector<16xf32>
    %109 = vector.shape_cast %108 : vector<16xf32> to vector<16x1xf32>
    %cst_46 = arith.constant 1.280000e+02 : f32
    %110 = vector.broadcast %cst_46 : f32 to vector<16x1xf32>
    %111 = arith.divf %109, %110 : vector<16x1xf32>
    %112 = vector.broadcast %104 : vector<16x1xf32> to vector<16x128xf32>
    %113 = arith.subf %96, %112 : vector<16x128xf32>
    %cst_47 = arith.constant 9.99999974E-6 : f32
    %114 = vector.broadcast %cst_47 : f32 to vector<16x1xf32>
    %115 = arith.addf %111, %114 : vector<16x1xf32>
    %116 = math.rsqrt %115 : vector<16x1xf32>
    %117 = vector.broadcast %116 : vector<16x1xf32> to vector<16x128xf32>
    %118 = arith.mulf %113, %117 : vector<16x128xf32>
    %119 = vector.broadcast %98 : vector<1x128xf32> to vector<16x128xf32>
    %120 = arith.mulf %118, %119 : vector<16x128xf32>
    %121 = vector.broadcast %100 : vector<1x128xf32> to vector<16x128xf32>
    %122 = arith.addf %120, %121 : vector<16x128xf32>
    %123 = arith.truncf %122 : vector<16x128xf32> to vector<16x128xbf16>
    %c0_48 = arith.constant 0 : index
    %c0_49 = arith.constant 0 : index
    %c0_50 = arith.constant 0 : index
    %c0_51 = arith.constant 0 : index
    %124 = vector.load %arg10[%c0_48, %c0_49, %c0_50, %c0_51] : memref<1x2x128x128xbf16, #tpu.memory_space<vmem>>, vector<1x1x128x128xbf16>
    %125 = vector.shape_cast %124 : vector<1x1x128x128xbf16> to vector<128x128xbf16>
    %cst_52 = arith.constant dense<0.000000e+00> : vector<16x128xf32>
    %126 = tpu.matmul %123, %125, %cst_52 {dimension_numbers = #tpu.dot_dimension_numbers<[1], [0], [0], [1], [0, 0, 1, 1], [], []>} : vector<16x128xbf16>, vector<128x128xbf16>, vector<16x128xf32> -> vector<16x128xf32>
    %c0_53 = arith.constant 0 : index
    %c3 = arith.constant 3 : index
    %c0_54 = arith.constant 0 : index
    %c0_55 = arith.constant 0 : index
    %127 = vector.load %arg9[%c0_53, %c3, %c0_54, %c0_55] : memref<1x7x1x128xf32, #tpu.memory_space<vmem>>, vector<1x1x1x128xf32>
    %128 = vector.shape_cast %127 : vector<1x1x1x128xf32> to vector<1x128xf32>
    %129 = vector.broadcast %128 : vector<1x128xf32> to vector<16x128xf32>
    %130 = arith.addf %126, %129 : vector<16x128xf32>
    %cst_56 = arith.constant 0.000000e+00 : f32
    %131 = vector.broadcast %cst_56 : f32 to vector<16x128xf32>
    %132 = arith.maximumf %130, %131 : vector<16x128xf32>
    %133 = arith.truncf %132 : vector<16x128xf32> to vector<16x128xbf16>
    %c0_57 = arith.constant 0 : index
    %c1_58 = arith.constant 1 : index
    %c0_59 = arith.constant 0 : index
    %c0_60 = arith.constant 0 : index
    %134 = vector.load %arg10[%c0_57, %c1_58, %c0_59, %c0_60] : memref<1x2x128x128xbf16, #tpu.memory_space<vmem>>, vector<1x1x128x128xbf16>
    %135 = vector.shape_cast %134 : vector<1x1x128x128xbf16> to vector<128x128xbf16>
    %cst_61 = arith.constant dense<0.000000e+00> : vector<16x128xf32>
    %136 = tpu.matmul %133, %135, %cst_61 {dimension_numbers = #tpu.dot_dimension_numbers<[1], [0], [0], [1], [0, 0, 1, 1], [], []>} : vector<16x128xbf16>, vector<128x128xbf16>, vector<16x128xf32> -> vector<16x128xf32>
    %c0_62 = arith.constant 0 : index
    %c4 = arith.constant 4 : index
    %c0_63 = arith.constant 0 : index
    %c0_64 = arith.constant 0 : index
    %137 = vector.load %arg9[%c0_62, %c4, %c0_63, %c0_64] : memref<1x7x1x128xf32, #tpu.memory_space<vmem>>, vector<1x1x1x128xf32>
    %138 = vector.shape_cast %137 : vector<1x1x1x128xf32> to vector<1x128xf32>
    %139 = vector.broadcast %138 : vector<1x128xf32> to vector<16x128xf32>
    %140 = arith.addf %136, %139 : vector<16x128xf32>
    %141 = arith.addf %122, %140 : vector<16x128xf32>
    %c0_65 = arith.constant 0 : index
    %c5 = arith.constant 5 : index
    %c0_66 = arith.constant 0 : index
    %c0_67 = arith.constant 0 : index
    %142 = vector.load %arg9[%c0_65, %c5, %c0_66, %c0_67] : memref<1x7x1x128xf32, #tpu.memory_space<vmem>>, vector<1x1x1x128xf32>
    %143 = vector.shape_cast %142 : vector<1x1x1x128xf32> to vector<1x128xf32>
    %c0_68 = arith.constant 0 : index
    %c6 = arith.constant 6 : index
    %c0_69 = arith.constant 0 : index
    %c0_70 = arith.constant 0 : index
    %144 = vector.load %arg9[%c0_68, %c6, %c0_69, %c0_70] : memref<1x7x1x128xf32, #tpu.memory_space<vmem>>, vector<1x1x1x128xf32>
    %145 = vector.shape_cast %144 : vector<1x1x1x128xf32> to vector<1x128xf32>
    %cst_71 = arith.constant dense<0.000000e+00> : vector<16xf32>
    %146 = vector.multi_reduction <add>, %141, %cst_71 [1] : vector<16x128xf32> to vector<16xf32>
    %147 = vector.shape_cast %146 : vector<16xf32> to vector<16x1xf32>
    %cst_72 = arith.constant 1.280000e+02 : f32
    %148 = vector.broadcast %cst_72 : f32 to vector<16x1xf32>
    %149 = arith.divf %147, %148 : vector<16x1xf32>
    %150 = vector.broadcast %149 : vector<16x1xf32> to vector<16x128xf32>
    %151 = arith.subf %141, %150 : vector<16x128xf32>
    %152 = arith.mulf %151, %151 : vector<16x128xf32>
    %cst_73 = arith.constant dense<0.000000e+00> : vector<16xf32>
    %153 = vector.multi_reduction <add>, %152, %cst_73 [1] : vector<16x128xf32> to vector<16xf32>
    %154 = vector.shape_cast %153 : vector<16xf32> to vector<16x1xf32>
    %cst_74 = arith.constant 1.280000e+02 : f32
    %155 = vector.broadcast %cst_74 : f32 to vector<16x1xf32>
    %156 = arith.divf %154, %155 : vector<16x1xf32>
    %157 = vector.broadcast %149 : vector<16x1xf32> to vector<16x128xf32>
    %158 = arith.subf %141, %157 : vector<16x128xf32>
    %cst_75 = arith.constant 9.99999974E-6 : f32
    %159 = vector.broadcast %cst_75 : f32 to vector<16x1xf32>
    %160 = arith.addf %156, %159 : vector<16x1xf32>
    %161 = math.rsqrt %160 : vector<16x1xf32>
    %162 = vector.broadcast %161 : vector<16x1xf32> to vector<16x128xf32>
    %163 = arith.mulf %158, %162 : vector<16x128xf32>
    %164 = vector.broadcast %143 : vector<1x128xf32> to vector<16x128xf32>
    %165 = arith.mulf %163, %164 : vector<16x128xf32>
    %166 = vector.broadcast %145 : vector<1x128xf32> to vector<16x128xf32>
    %167 = arith.addf %165, %166 : vector<16x128xf32>
    %c0_76 = arith.constant 0 : index
    %c0_77 = arith.constant 0 : index
    %168 = vector.load %arg14[%c0_76, %c0_77] : memref<16x128xf32, #tpu.memory_space<vmem>>, vector<16x128xf32>
    tpu.vector_store %arg14[%c0_76, %c0_77], %167 {strides = array<i32>} : memref<16x128xf32, #tpu.memory_space<vmem>>, vector<16x128xf32>,
    %c3_i32 = arith.constant 3 : i32
    %169 = arith.cmpi eq, %arg0, %c3_i32 : i32
    %170 = arith.extui %169 : i1 to i32
    %c0_i32_78 = arith.constant 0 : i32
    %171 = arith.cmpi ne, %170, %c0_i32_78 : i32
    scf.if %171 {
      %172 = vector.extract_strided_slice %167 {offsets = [0, 0], sizes = [1, 128], strides = [1, 1]} : vector<16x128xf32> to vector<1x128xf32>
      %173 = vector.extract_strided_slice %167 {offsets = [8, 0], sizes = [1, 128], strides = [1, 1]} : vector<16x128xf32> to vector<1x128xf32>
      %174 = tpu.concatenate %172, %173 in 0 : vector<1x128xf32>, vector<1x128xf32> -> vector<2x128xf32>
      %175 = arith.truncf %174 : vector<2x128xf32> to vector<2x128xbf16>
      %c0_79 = arith.constant 0 : index
      %c0_80 = arith.constant 0 : index
      %176 = vector.load %arg11[%c0_79, %c0_80] : memref<128x7xbf16, #tpu.memory_space<vmem>>, vector<128x7xbf16>
      %cst_81 = arith.constant dense<0.000000e+00> : vector<2x7xf32>
      %177 = tpu.matmul %175, %176, %cst_81 {dimension_numbers = #tpu.dot_dimension_numbers<[1], [0], [0], [1], [0, 0, 1, 1], [], []>} : vector<2x128xbf16>, vector<128x7xbf16>, vector<2x7xf32> -> vector<2x7xf32>
      %c0_82 = arith.constant 0 : index
      %c0_83 = arith.constant 0 : index
      %178 = vector.load %arg12[%c0_82, %c0_83] : memref<1x7xf32, #tpu.memory_space<vmem>>, vector<1x7xf32>
      %179 = vector.broadcast %178 : vector<1x7xf32> to vector<2x7xf32>
      %180 = arith.addf %177, %179 : vector<2x7xf32>
      %c0_84 = arith.constant 0 : index
      %c0_85 = arith.constant 0 : index
      %181 = vector.load %arg13[%c0_84, %c0_85] : memref<2x7xf32, #tpu.memory_space<vmem>>, vector<2x7xf32>
      tpu.vector_store %arg13[%c0_84, %c0_85], %180 {strides = array<i32>} : memref<2x7xf32, #tpu.memory_space<vmem>>, vector<2x7xf32>,
    } else {
    }
    return
  }
  func.func @transform_0(%arg0: i32) -> (i32, i32) {
    %c0_i32 = arith.constant 0 : i32
    %c0_i32_0 = arith.constant 0 : i32
    %c0_i32_1 = arith.constant 0 : i32
    return %c0_i32, %c0_i32_0 : i32, i32
  }
  func.func @transform_1(%arg0: i32) -> (i32, i32) {
    %c0_i32 = arith.constant 0 : i32
    %c0_i32_0 = arith.constant 0 : i32
    %c0_i32_1 = arith.constant 0 : i32
    return %c0_i32, %c0_i32_0 : i32, i32
  }
  func.func @transform_2(%arg0: i32) -> (i32, i32) {
    %c0_i32 = arith.constant 0 : i32
    %c0_i32_0 = arith.constant 0 : i32
    %c0_i32_1 = arith.constant 0 : i32
    return %c0_i32, %c0_i32_0 : i32, i32
  }
  func.func @transform_3(%arg0: i32) -> (i32, i32) {
    %c0_i32 = arith.constant 0 : i32
    %c0_i32_0 = arith.constant 0 : i32
    %c0_i32_1 = arith.constant 0 : i32
    return %c0_i32, %c0_i32_0 : i32, i32
  }
  func.func @transform_4(%arg0: i32) -> (i32, i32) {
    %c0_i32 = arith.constant 0 : i32
    %c0_i32_0 = arith.constant 0 : i32
    %c0_i32_1 = arith.constant 0 : i32
    return %c0_i32, %c0_i32_0 : i32, i32
  }
  func.func @transform_5(%arg0: i32) -> (i32, i32, i32) {
    %c0_i32 = arith.constant 0 : i32
    %c0_i32_0 = arith.constant 0 : i32
    %c0_i32_1 = arith.constant 0 : i32
    return %arg0, %c0_i32, %c0_i32_0 : i32, i32, i32
  }
  func.func @transform_6(%arg0: i32) -> (i32, i32, i32) {
    %c0_i32 = arith.constant 0 : i32
    %c0_i32_0 = arith.constant 0 : i32
    %c0_i32_1 = arith.constant 0 : i32
    return %arg0, %c0_i32, %c0_i32_0 : i32, i32, i32
  }
  func.func @transform_7(%arg0: i32) -> (i32, i32, i32) {
    %c0_i32 = arith.constant 0 : i32
    %c0_i32_0 = arith.constant 0 : i32
    %c0_i32_1 = arith.constant 0 : i32
    return %arg0, %c0_i32, %c0_i32_0 : i32, i32, i32
  }
  func.func @transform_8(%arg0: i32) -> (i32, i32, i32, i32) {
    %c0_i32 = arith.constant 0 : i32
    %c0_i32_0 = arith.constant 0 : i32
    %c0_i32_1 = arith.constant 0 : i32
    %c0_i32_2 = arith.constant 0 : i32
    return %arg0, %c0_i32, %c0_i32_0, %c0_i32_1 : i32, i32, i32, i32
  }
  func.func @transform_9(%arg0: i32) -> (i32, i32, i32, i32) {
    %c0_i32 = arith.constant 0 : i32
    %c0_i32_0 = arith.constant 0 : i32
    %c0_i32_1 = arith.constant 0 : i32
    %c0_i32_2 = arith.constant 0 : i32
    return %arg0, %c0_i32, %c0_i32_0, %c0_i32_1 : i32, i32, i32, i32
  }
  func.func @transform_10(%arg0: i32) -> (i32, i32) {
    %c0_i32 = arith.constant 0 : i32
    %c0_i32_0 = arith.constant 0 : i32
    %c0_i32_1 = arith.constant 0 : i32
    return %c0_i32, %c0_i32_0 : i32, i32
  }
  func.func @transform_11(%arg0: i32) -> (i32, i32) {
    %c0_i32 = arith.constant 0 : i32
    %c0_i32_0 = arith.constant 0 : i32
    %c0_i32_1 = arith.constant 0 : i32
    return %c0_i32, %c0_i32_0 : i32, i32
  }
  func.func @transform_12(%arg0: i32) -> (i32, i32) {
    %c0_i32 = arith.constant 0 : i32
    %c0_i32_0 = arith.constant 0 : i32
    %c0_i32_1 = arith.constant 0 : i32
    return %c0_i32, %c0_i32_0 : i32, i32
  }
}

</mosaic_0001>

<bundles_post_ra>
// kernel: tpu_custom_call.1
= control target key start
LH: loop header
LB: loop body
LE: loop exit
PB: predicated region body
PF: predicated region fallthrough
CT: control target
= control target key end

     0   :  { %s4799_s0 = inlined_call_operand.vmem [shape: bf16[16,768], index: 0, kind: input, shape index: {}]   ;;  %s4800_s1 = inlined_call_operand.hbm [shape: bf16[768,256], index: 1, kind: input, shape index: {}]   ;;  %s4801_s2 = inlined_call_operand.vmem [shape: f32[1,256], index: 2, kind: input, shape index: {}]   ;;  %s4802_s3 = inlined_call_operand.hbm [shape: bf16[256,128], index: 3, kind: input, shape index: {}]   ;;  %s4803_s4 = inlined_call_operand.vmem [shape: f32[1,128], index: 4, kind: input, shape index: {}]   ;;  %s4804_s5 = inlined_call_operand.hbm [shape: bf16[4,128,384], index: 5, kind: input, shape index: {}]   ;;  %s4805_s6 = inlined_call_operand.vmem [shape: f32[4,1,384], index: 6, kind: input, shape index: {}]   ;;  %s4806_s7 = inlined_call_operand.hbm [shape: bf16[4,128,128], index: 7, kind: input, shape index: {}]   ;;  %s4807_s8 = inlined_call_operand.hbm [shape: f32[4,7,1,128], index: 8, kind: input, shape index: {}]   ;;  %s4808_s9 = inlined_call_operand.hbm [shape: bf16[4,2,128,128], index: 9, kind: input, shape index: {}]   ;;  %s4809_s10 = inlined_call_operand.vmem [shape: bf16[128,7], index: 10, kind: input, shape index: {}]   ;;  %s4810_s11 = inlined_call_operand.vmem [shape: f32[1,7], index: 11, kind: input, shape index: {}]   ;;  %s4811_s12 = inlined_call_operand.hbm [shape: f32[2,7], index: 12, kind: output, shape index: {}]  }
   0x1   :  { %4816 = sst [smem:[#allocation20_spill]] %s4800_s1 }
   0x2   :  { %4817 = sst [smem:[#allocation21_spill]] %s4801_s2 }
   0x3   :  { %4818 = sst [smem:[#allocation22_spill]] %s4803_s4 }
   0x4   :  { %4819 = sst [smem:[#allocation23_spill]] %s4804_s5 }
   0x5   :  { %4820 = sst [smem:[#allocation24_spill]] %s4806_s7 }
   0x6   :  { %4821 = sst [smem:[#allocation25_spill]] %s4809_s10 }
   0x7   :  { %4822 = sst [smem:[#allocation26_spill]] %s4810_s11 }
   0x8   :  { %4823 = sst [smem:[#allocation27_spill]] %s4811_s12 }
   0x9   :  { %17 = vsyncpa [#allocation4], 0 }
   0xa   :  { %18 = vsyncpa [#allocation7], 0 }
   0xb   :  { %19 = vsyncpa [#allocation5], 0  ;;  %s4272_s21 = smov 0   ;;  %s4274_s22 = smov 0  }
   0xc   :  { %s4276_s23 = smov 0   ;;  %s4278_s24 = smov 0  }
   0xd LB: > { %4824 = sst [smem:[#allocation17_spill]] %s4186_s23  ;;  %s4291_s25 = sadd.s32 4294967295, %s4190_s24   ;;  %s4190_s24 = sphi %s4278_s24, %s4844_s24   ;;  %s4186_s23 = sphi %s4276_s23, %s4846_s23   ;;  %s4182_s22 = sphi %s4274_s22, %s4848_s22   ;;  %s4178_s21 = sphi %s4272_s21, %s4847_s21  }
   0xe   : > { %s4294_s26 = sadd.s32 1, %s4190_s24   ;;  %s137_s28 = sadd.s32 1, %s4186_s23 }
   0xf   : > { %4825 = sst [smem:[#allocation18_spill]] %s4294_s26  ;;  %s134_s27 = ssub.s32 %s4190_s24, %s4294_s26 }
  0x10   : > { %p135_p0 = scmp.eq.s32.totalorder %s134_s27, 0  ;;  %p144_p1 = scmp.ne.s32.totalorder %s4186_s23, %s4182_s22 }
  0x11   : > { %p145_p2 = scmp.eq.s32.totalorder %s4190_s24, 0  ;;  %p150_p3 = scmp.ne.s32.totalorder %s4182_s22, %s4178_s21 }
  0x12   : > { %s4304_s29 = scalar_select %p135_p0, %s4186_s23, %s137_s28  }
  0x13   : > { %p4306_p4 = por %p145_p2, %p144_p1  ;;  %p151_p5 = scmp.eq.s32.totalorder %s4291_s25, 0 }
  0x14   : > { %4826 = sst [smem:[#allocation19_spill]] %s4304_s29  ;;  %p2812_p6 = scmp.ge.s32.totalorder %s4190_s24, 1 }
  0x15   : > { %p328_p7 = scmp.lt.s32.totalorder %s4190_s24, 5  ;;  %p4315_p8 = por %p151_p5, %p150_p3 }
  0x16   : > { %p2813_p9 = scmp.ne.s32.totalorder %s4291_s25, 0  ;;  %s4830_s1 = sld [smem:[#allocation20_spill]] }
  0x17   : > { %p4320_p10 = pnand %p2812_p6, %p328_p7  ;;  %s4192_s18 = smov [#allocation3]  }
  0x18   : > { %s344_s19 = sshll.u32 %s4192_s18, 4  ;;  %p3803_p13 = scmp.lt.s32.totalorder %s4190_s24, 4  ;;  %s345_s19 = int_to_ptr.vmem [resolvable:$true] %s344_s19 }
  0x19   : > { %p3781_p11 = pneg %p4320_p10  ;;  %s384_s21 = sand.u32 1, %s4190_s24  }
  0x1a   : > { %s4193_s27 = smov 128   ;;  %s4194_s28 = smov 8  }
  0x1b   : > { %p4331_p12 = pnand %p3781_p11, %p151_p5  ;;  %s4340_s15 = sand.u32 1, %s4186_s23  }
  0x1c   : > { %s342_s17 = sshll.u32 %s4830_s1, 4  ;;  %s3754_s16 = smul.u32 192, %s4340_s15  ;;  %s343_s17 = int_to_ptr.hbm [resolvable:$true] %s342_s17 }
  0x1d   : > { %3784 = dma.hbm_to_vmem [thread:$0]  (!%p4331_p12), %s343_s17, 12288, %s345_s19, [#allocation4], %s4193_s27, %s4193_s27, %s4194_s28  }
  0x1e   : > { %p4345_p0 = pnand %p3803_p13, %p4306_p4  ;;  %s3755_s1 = smul.u32 192, %s4190_s24 }
  0x1f   : > { %s4833_s5 = sld [smem:[#allocation23_spill]]  ;;  %s388_s11 = scalar_lea.vmem [#allocation8], %s3754_s16 }
  0x20   : > { %s396_s10 = sshll.u32 %s388_s11, 4  ;;  %s4353_s17 = scalar_lea.sflag [#allocation4], %s384_s21  ;;  %s397_s10 = int_to_ptr.vmem [resolvable:$true] %s396_s10 }
  0x21   : > { %p3970_p2 = pneg %p4345_p0 }
  0x25   : > { %s393_s12 = scalar_lea.hbm %s4833_s5, %s3755_s1  ;;  %s3973_s1 = scalar_lea.hbm %s4833_s5, 768 }
  0x26   : > { %s394_s4 = sshll.u32 %s393_s12, 4  ;;  %s395_s4 = int_to_ptr.hbm [resolvable:$true] %s394_s4 }
  0x27   : > { %s3966_s19 = sshra.s32 %s395_s4, 4  ;;  %s3967_s19 = int_to_ptr.hbm [resolvable:$true] %s3966_s19 }
  0x28   : > { %s3968_s30 = scalar_lea.hbm %s3967_s19, 192  ;;  %p3974_p6 = scmp.lt.s32.totalorder %s3967_s19, %s4833_s5 }
  0x29   : > { %p3969_p1 = scmp.ne.s32.totalorder %s3967_s19, %s3968_s30  ;;  %p3975_p7 = scmp.lt.s32.totalorder %s3973_s1, %s3968_s30 }
  0x2b   : > { %p3971_p3 = pnand %p3970_p2, %p3969_p1  ;;  %p3976_p11 = por %p3975_p7, %p3974_p6 }
  0x2d   : > { %p3972_p4 = pneg %p3971_p3 }
  0x2f   : > { %p3977_p13 = pnand %p3976_p11, %p3972_p4 }
  0x31   : > { %3980 = shalt.err (!%p3977_p13)
}
  0x32   : > { %s4195_s29 = smov 192   ;;  %s4196_s21 = smov 12  }
  0x33   : > { %3791 = dma.hbm_to_vmem [thread:$0]  (!%p4345_p0), %s395_s4, 3072, %s397_s10, %s4353_s17, %s4195_s29, %s4195_s29, %s4196_s21  }
  0x34   : > { %s2817_s28 = sshll.u32 %s4340_s15, 6  ;;  %s3576_s16 = sshll.u32 %s4190_s24, 6 }
  0x35   : > { %s4834_s7 = sld [smem:[#allocation24_spill]]  ;;  %s417_s30 = scalar_lea.vmem [#allocation9], %s2817_s28 }
  0x36   : > { %s425_s1 = sshll.u32 %s417_s30, 4  ;;  %s426_s1 = int_to_ptr.vmem [resolvable:$true] %s425_s1 }
  0x3b   : > { %s422_s11 = scalar_lea.hbm %s4834_s7, %s3576_s16  ;;  %s4003_s29 = scalar_lea.hbm %s4834_s7, 256 }
  0x3c   : > { %s423_s19 = sshll.u32 %s422_s11, 4  ;;  %s424_s19 = int_to_ptr.hbm [resolvable:$true] %s423_s19 }
  0x3d   : > { %s3996_s12 = sshra.s32 %s424_s19, 4  ;;  %s3997_s12 = int_to_ptr.hbm [resolvable:$true] %s3996_s12 }
  0x3e   : > { %s3998_s5 = scalar_lea.hbm %s3997_s12, 64  ;;  %p4004_p6 = scmp.lt.s32.totalorder %s3997_s12, %s4834_s7 }
  0x3f   : > { %p3999_p1 = scmp.ne.s32.totalorder %s3997_s12, %s3998_s5  ;;  %p4005_p7 = scmp.lt.s32.totalorder %s4003_s29, %s3998_s5 }
  0x41   : > { %p4001_p3 = pnand %p3999_p1, %p3970_p2  ;;  %p4006_p11 = por %p4005_p7, %p4004_p6 }
  0x43   : > { %p4002_p4 = pneg %p4001_p3 }
  0x45   : > { %p4007_p13 = pnand %p4006_p11, %p4002_p4 }
  0x47   : > { %4010 = shalt.err (!%p4007_p13)
}
  0x48   : > { %s4197_s28 = smov 64   ;;  %s4198_s16 = smov 4  }
  0x49   : > { %3794 = dma.hbm_to_vmem [thread:$0]  (!%p4345_p0), %s424_s19, 1024, %s426_s1, %s4353_s17, %s4197_s28, %s4197_s28, %s4198_s16  }
  0x4a   : > { %s3756_s26 = smul.u32 7, %s4340_s15  ;;  %s359_s5 = sshll.u32 %s4802_s3, 4  ;;  %s360_s5 = int_to_ptr.hbm [resolvable:$true] %s359_s5 }
  0x4b   : > { %s3757_s11 = smul.u32 7, %s4190_s24  ;;  %s4033_s30 = scalar_lea.hbm %s4807_s8, 28 }
  0x4c   : > { %s439_s21 = scalar_lea.vmem [#allocation10], %s3756_s26 }
  0x4d   : > { %s443_s29 = scalar_lea.hbm %s4807_s8, %s3757_s11  ;;  %s446_s27 = sshll.u32 %s439_s21, 4  ;;  %s447_s27 = int_to_ptr.vmem [resolvable:$true] %s446_s27 }
  0x4e   : > { %s444_s7 = sshll.u32 %s443_s29, 4  ;;  %s445_s7 = int_to_ptr.hbm [resolvable:$true] %s444_s7 }
  0x4f   : > { %s4026_s23 = sshra.s32 %s445_s7, 4  ;;  %s4027_s23 = int_to_ptr.hbm [resolvable:$true] %s4026_s23 }
  0x50   : > { %s4028_s2 = scalar_lea.hbm %s4027_s23, 7  ;;  %p4034_p6 = scmp.lt.s32.totalorder %s4027_s23, %s4807_s8 }
  0x51   : > { %p4029_p1 = scmp.ne.s32.totalorder %s4027_s23, %s4028_s2  ;;  %p4035_p7 = scmp.lt.s32.totalorder %s4033_s30, %s4028_s2 }
  0x53   : > { %p4031_p3 = pnand %p4029_p1, %p3970_p2  ;;  %p4036_p11 = por %p4035_p7, %p4034_p6 }
  0x55   : > { %p4032_p4 = pneg %p4031_p3 }
  0x57   : > { %p4037_p13 = pnand %p4036_p11, %p4032_p4 }
  0x59   : > { %4040 = shalt.err (!%p4037_p13)
}
  0x5a   : > { %s4199_s26 = smov 16   ;;  %s4200_s4 = smov 1  }
  0x5b   : > { %3797 = dma.hbm_to_vmem [thread:$0]  (!%p4345_p0), %s445_s7, 112, %s447_s27, %s4353_s17, %s4199_s26, %s4199_s26, %s4200_s4  }
  0x5c   : > { %s2820_s10 = sshll.u32 %s4340_s15, 7  ;;  %s4201_s29 = smov [#allocation6]  }
  0x5d   : > { %s361_s21 = sshll.u32 %s4201_s29, 4  ;;  %s3577_s19 = sshll.u32 %s4190_s24, 7  ;;  %s362_s21 = int_to_ptr.vmem [resolvable:$true] %s361_s21 }
  0x5e   : > { %3787 = dma.hbm_to_vmem [thread:$0]  (!%p4331_p12), %s360_s5, 2048, %s362_s21, [#allocation7], %s4197_s28, %s4197_s28, %s4198_s16  }
  0x5f   : > { %s465_s1 = scalar_lea.hbm %s4808_s9, %s3577_s19  ;;  %s460_s30 = scalar_lea.vmem [#allocation11], %s2820_s10 }
  0x60   : > { %s468_s12 = sshll.u32 %s460_s30, 4  ;;  %s466_s11 = sshll.u32 %s465_s1, 4  ;;  %s469_s12 = int_to_ptr.vmem [resolvable:$true] %s468_s12  ;;  %s467_s11 = int_to_ptr.hbm [resolvable:$true] %s466_s11 }
  0x61   : > { %s4086_s7 = sshra.s32 %s467_s11, 4  ;;  %s4093_s5 = scalar_lea.hbm %s4808_s9, 512  ;;  %s4087_s7 = int_to_ptr.hbm [resolvable:$true] %s4086_s7 }
  0x62   : > { %s4088_s15 = scalar_lea.hbm %s4087_s7, 128  ;;  %p4094_p12 = scmp.lt.s32.totalorder %s4087_s7, %s4808_s9 }
  0x63   : > { %p4089_p1 = scmp.ne.s32.totalorder %s4087_s7, %s4088_s15  ;;  %p4095_p6 = scmp.lt.s32.totalorder %s4093_s5, %s4088_s15 }
  0x65   : > { %p4091_p3 = pnand %p4089_p1, %p3970_p2  ;;  %p4096_p7 = por %p4095_p6, %p4094_p12 }
  0x67   : > { %p4092_p4 = pneg %p4091_p3 }
  0x69   : > { %p4097_p11 = pnand %p4096_p7, %p4092_p4 }
  0x6b   : > { %4100 = shalt.err (!%p4097_p11)
}
  0x6c   : > { %3800 = dma.hbm_to_vmem [thread:$0]  (!%p4345_p0), %s467_s11, 2048, %s469_s12, %s4353_s17, %s4197_s28, %s4197_s28, %s4198_s16  }
  0x6d   : > { %480 = sbr.rel (%p4320_p10) target bundleno = 3283 (0xcd3), region = 68 }
  0x72   : > { %4161 = dma.done.wait (%p151_p5), [#allocation4], 12288  }
  0x73   : > { %4163 = vsyncadd (%p151_p5), [#allocation4], 4294955008 }
  0x74   : > { %4165 = dma.done.wait (%p151_p5), [#allocation7], 2048  }
  0x75   : > { %4167 = vsyncadd (%p151_p5), [#allocation7], 4294965248  ;;  %s492_s18 = sand.u32 1, %s4291_s25   ;;  %s494_s17 = sand.u32 1, %s4182_s22  }
  0x76   : > { %s3758_s28 = smul.u32 192, %s494_s17  ;;  %s493_s14 = scalar_lea.sflag [#allocation4], %s492_s18 }
  0x78   : > { %s4446_s16 = scalar_lea.vmem [#allocation8], %s3758_s28 }
  0x79   : > { %4169 = dma.done.wait (%p4315_p8), %s493_s14, 6256  }
  0x7a   : > { %4171 = vsyncadd (%p4315_p8), %s493_s14, 4294961040  ;;  %s2826_s4 = sshll.u32 %s494_s17, 6  ;;  %s3759_s10 = smul.u32 7, %s494_s17 }
  0x7b   : > { %s2827_s29 = sshll.u32 %s494_s17, 7  ;;  %p582_p5 = scmp.lt.s32.totalorder %s4291_s25, 3 }
  0x7c   : > { %s4459_s30 = scalar_lea.vmem [#allocation9], %s2826_s4  ;;  %s4461_s12 = scalar_lea.vmem [#allocation10], %s3759_s10 }
  0x7d   : > { %s583_s21 = scalar_select %p582_p5, %s4291_s25, 3 }
  0x7e   : > { %s4463_s11 = scalar_lea.vmem [#allocation11], %s2827_s29  ;;  %589 = sbr.rel (%p2813_p9) target bundleno = 517 (0x205), region = 96 }
  0x7f   : > { %s3760_s19 = smul.u32 3, %s583_s21  ;;  %s4835_s26 = sld [smem:[#allocation21_spill]] (!%p2813_p9) }
  0x80   : > { %s4836_s28 = sld [smem:[#allocation22_spill]] (!%p2813_p9) }
  0x81   : > { %s4457_s1 = scalar_lea.vmem %s4805_s6, %s3760_s19 }
  0x83   : > { %v2911_v0 = vld [vmem:[#allocation3 + $0x70] sm:$0xf]  ;;  %v3599_v1 = vld [vmem:[#allocation3 + $0x74] sm:$0xf0]  ;;  %v2903_v11 = vld [vmem:[#allocation3 + $0x60] sm:$0xf] }
  0x84   : > { %v2975_v2 = vld [vmem:[#allocation3 + $0xf0] sm:$0xf]  ;;  %v2912_v3 = vor.u32 %v3599_v1, %v2911_v0  ;;  %v3615_v4 = vld [vmem:[#allocation3 + $0xf4] sm:$0xf0]  ;;  %v3597_v13 = vld [vmem:[#allocation3 + $0x64] sm:$0xf0] }
  0x85   : > { %v3039_v5 = vld [vmem:[#allocation3 + $0x170] sm:$0xf]  ;;  %v3631_v6 = vld [vmem:[#allocation3 + $0x174] sm:$0xf0]  ;;  %v2976_v7 = vor.u32 %v3615_v4, %v2975_v2  ;;  %v2967_v14 = vld [vmem:[#allocation3 + $0xe0] sm:$0xf]  ;;  %v2904_v16 = vor.u32 %v3597_v13, %v2903_v11 }
  0x86   : > { %v3040_v8 = vor.u32 %v3631_v6, %v3039_v5  ;;  %v3103_v9 = vld [vmem:[#allocation3 + $0x1f0] sm:$0xf]  ;;  %v3647_v10 = vld [vmem:[#allocation3 + $0x1f4] sm:$0xf0]  ;;  %1208 = vmatpush.bf16.msra.mxu0 %v2912_v3  ;;  %v3613_v15 = vld [vmem:[#allocation3 + $0xe4] sm:$0xf0] }
  0x87   : > { %v3104_v12 = vor.u32 %v3647_v10, %v3103_v9  ;;  %1222 = vmatpush.bf16.msra.mxu1 %v2976_v7  ;;  %v2968_v17 = vor.u32 %v3613_v15, %v2967_v14  ;;  %v3031_v18 = vld [vmem:[#allocation3 + $0x160] sm:$0xf]  ;;  %v3629_v19 = vld [vmem:[#allocation3 + $0x164] sm:$0xf0]  ;;  %v2895_v23 = vld [vmem:[#allocation3 + $0x50] sm:$0xf] }
  0x88   : > { %1236 = vmatpush.bf16.msra.mxu2 %v3040_v8  ;;  %v3095_v20 = vld [vmem:[#allocation3 + $0x1e0] sm:$0xf]  ;;  %v3032_v21 = vor.u32 %v3629_v19, %v3031_v18  ;;  %v3645_v22 = vld [vmem:[#allocation3 + $0x1e4] sm:$0xf0]  ;;  %v3595_v24 = vld [vmem:[#allocation3 + $0x54] sm:$0xf0] }
  0x89   : > { %1250 = vmatpush.bf16.msra.mxu3 %v3104_v12  ;;  %v3096_v25 = vor.u32 %v3645_v22, %v3095_v20  ;;  %v2959_v26 = vld [vmem:[#allocation3 + $0xd0] sm:$0xf]  ;;  %v3611_v27 = vld [vmem:[#allocation3 + $0xd4] sm:$0xf0]  ;;  %v2896_v29 = vor.u32 %v3595_v24, %v2895_v23  ;;  %v2887_v35 = vld [vmem:[#allocation3 + $0x40] sm:$0xf] }
  0x8a   : > { %v3023_v28 = vld [vmem:[#allocation3 + $0x150] sm:$0xf]  ;;  %1209 = vmatpush.bf16.msra.mxu0 %v2904_v16  ;;  %v3627_v30 = vld [vmem:[#allocation3 + $0x154] sm:$0xf0]  ;;  %v2960_v33 = vor.u32 %v3611_v27, %v2959_v26  ;;  %v3593_v36 = vld [vmem:[#allocation3 + $0x44] sm:$0xf0] }
  0x8b   : > { %v3087_v31 = vld [vmem:[#allocation3 + $0x1d0] sm:$0xf]  ;;  %v3643_v32 = vld [vmem:[#allocation3 + $0x1d4] sm:$0xf0]  ;;  %1223 = vmatpush.bf16.msra.mxu1 %v2968_v17  ;;  %v3024_v34 = vor.u32 %v3627_v30, %v3023_v28  ;;  %v2951_v37 = vld [vmem:[#allocation3 + $0xc0] sm:$0xf]  ;;  %v2888_v44 = vor.u32 %v3593_v36, %v2887_v35 }
  0x8c   : > { %1237 = vmatpush.bf16.msra.mxu2 %v3032_v21  ;;  %v3088_v38 = vor.u32 %v3643_v32, %v3087_v31  ;;  %v3609_v39 = vld [vmem:[#allocation3 + $0xc4] sm:$0xf0]  ;;  %v3015_v40 = vld [vmem:[#allocation3 + $0x140] sm:$0xf]  ;;  %v2879_v47 = vld [vmem:[#allocation3 + $0x30] sm:$0xf] }
  0x8d   : > { %1251 = vmatpush.bf16.msra.mxu3 %v3096_v25  ;;  %v3625_v41 = vld [vmem:[#allocation3 + $0x144] sm:$0xf0]  ;;  %v3079_v42 = vld [vmem:[#allocation3 + $0x1c0] sm:$0xf]  ;;  %v2952_v45 = vor.u32 %v3609_v39, %v2951_v37  ;;  %v3591_v48 = vld [vmem:[#allocation3 + $0x34] sm:$0xf0] }
  0x8e   : > { %v3641_v43 = vld [vmem:[#allocation3 + $0x1c4] sm:$0xf0]  ;;  %1210 = vmatpush.bf16.msra.mxu0 %v2896_v29  ;;  %v3016_v46 = vor.u32 %v3625_v41, %v3015_v40  ;;  %v2943_v49 = vld [vmem:[#allocation3 + $0xb0] sm:$0xf]  ;;  %v3607_v51 = vld [vmem:[#allocation3 + $0xb4] sm:$0xf0]  ;;  %v2880_v56 = vor.u32 %v3591_v48, %v2879_v47 }
  0x8f   : > { %1224 = vmatpush.bf16.msra.mxu1 %v2960_v33  ;;  %v3080_v50 = vor.u32 %v3641_v43, %v3079_v42  ;;  %v3007_v52 = vld [vmem:[#allocation3 + $0x130] sm:$0xf]  ;;  %v3623_v53 = vld [vmem:[#allocation3 + $0x134] sm:$0xf0]  ;;  %v2944_v57 = vor.u32 %v3607_v51, %v2943_v49  ;;  %v2871_v59 = vld [vmem:[#allocation3 + $0x20] sm:$0xf] }
  0x90   : > { %1238 = vmatpush.bf16.msra.mxu2 %v3024_v34  ;;  %v3071_v54 = vld [vmem:[#allocation3 + $0x1b0] sm:$0xf]  ;;  %v3639_v55 = vld [vmem:[#allocation3 + $0x1b4] sm:$0xf0]  ;;  %v3008_v58 = vor.u32 %v3623_v53, %v3007_v52  ;;  %v3589_v60 = vld [vmem:[#allocation3 + $0x24] sm:$0xf0] }
  0x91   : > { %1252 = vmatpush.bf16.msra.mxu3 %v3088_v38  ;;  %v2935_v61 = vld [vmem:[#allocation3 + $0xa0] sm:$0xf]  ;;  %v3072_v62 = vor.u32 %v3639_v55, %v3071_v54  ;;  %v3605_v63 = vld [vmem:[#allocation3 + $0xa4] sm:$0xf0]  ;;  %v2872_v4 = vor.u32 %v3589_v60, %v2871_v59  ;;  %v2863_v7 = vld [vmem:[#allocation3 + $0x10] sm:$0xf] }
  0x92   : > { %1211 = vmatpush.bf16.msra.mxu0 %v2888_v44  ;;  %v2999_v0 = vld [vmem:[#allocation3 + $0x120] sm:$0xf]  ;;  %v3621_v1 = vld [vmem:[#allocation3 + $0x124] sm:$0xf0]  ;;  %v2936_v5 = vor.u32 %v3605_v63, %v2935_v61  ;;  %v3587_v8 = vld [vmem:[#allocation3 + $0x14] sm:$0xf0] }
  0x93   : > { %1225 = vmatpush.bf16.msra.mxu1 %v2952_v45  ;;  %v3063_v2 = vld [vmem:[#allocation3 + $0x1a0] sm:$0xf]  ;;  %v3637_v3 = vld [vmem:[#allocation3 + $0x1a4] sm:$0xf0]  ;;  %v3000_v6 = vor.u32 %v3621_v1, %v2999_v0  ;;  %v2927_v9 = vld [vmem:[#allocation3 + $0x90] sm:$0xf]  ;;  %v2864_v16 = vor.u32 %v3587_v8, %v2863_v7 }
  0x94   : > { %1239 = vmatpush.bf16.msra.mxu2 %v3016_v46  ;;  %v3064_v10 = vor.u32 %v3637_v3, %v3063_v2  ;;  %v3603_v11 = vld [vmem:[#allocation3 + $0x94] sm:$0xf0]  ;;  %v2991_v12 = vld [vmem:[#allocation3 + $0x110] sm:$0xf]  ;;  %v2855_v17 = vld [vmem:[#allocation3] sm:$0xf] }
  0x95   : > { %1253 = vmatpush.bf16.msra.mxu3 %v3080_v50  ;;  %v3619_v13 = vld [vmem:[#allocation3 + $0x114] sm:$0xf0]  ;;  %v3055_v14 = vld [vmem:[#allocation3 + $0x190] sm:$0xf]  ;;  %v3585_v18 = vld [vmem:[#allocation3 + $0x4] sm:$0xf0]  ;;  %v2928_v19 = vor.u32 %v3603_v11, %v2927_v9 }
  0x96   : > { %1212 = vmatpush.bf16.msra.mxu0 %v2880_v56  ;;  %v3635_v15 = vld [vmem:[#allocation3 + $0x194] sm:$0xf0]  ;;  %v2992_v20 = vor.u32 %v3619_v13, %v2991_v12  ;;  %v2919_v21 = vld [vmem:[#allocation3 + $0x80] sm:$0xf]  ;;  %v3601_v22 = vld [vmem:[#allocation3 + $0x84] sm:$0xf0]  ;;  %v2856_v31 = vor.u32 %v3585_v18, %v2855_v17 }
  0x97   : > { %1226 = vmatpush.bf16.msra.mxu1 %v2944_v57  ;;  %v2983_v23 = vld [vmem:[#allocation3 + $0x100] sm:$0xf]  ;;  %v3056_v24 = vor.u32 %v3635_v15, %v3055_v14  ;;  %v3617_v25 = vld [vmem:[#allocation3 + $0x104] sm:$0xf0]  ;;  %v3167_v28 = vld [vmem:[#allocation3 + $0x270] sm:$0xf]  ;;  %v2920_v35 = vor.u32 %v3601_v22, %v2919_v21 }
  0x98   : > { %1240 = vmatpush.bf16.msra.mxu2 %v3008_v58  ;;  %v3047_v26 = vld [vmem:[#allocation3 + $0x180] sm:$0xf]  ;;  %v3633_v27 = vld [vmem:[#allocation3 + $0x184] sm:$0xf0]  ;;  %v3663_v29 = vld [vmem:[#allocation3 + $0x274] sm:$0xf0]  ;;  %v2984_v36 = vor.u32 %v3617_v25, %v2983_v23 }
  0x99   : > { %1254 = vmatpush.bf16.msra.mxu3 %v3072_v62  ;;  %v3231_v30 = vld [vmem:[#allocation3 + $0x2f0] sm:$0xf]  ;;  %v3679_v32 = vld [vmem:[#allocation3 + $0x2f4] sm:$0xf0]  ;;  %v3598_v33 = vld [vmem:[#allocation3 + $0x74] sm:$0xf]  ;;  %v3048_v39 = vor.u32 %v3633_v27, %v3047_v26  ;;  %v3168_v40 = vor.u32 %v3663_v29, %v3167_v28 }
  0x9a   : > { %1213 = vmatpush.bf16.msra.mxu0 %v2872_v4  ;;  %v2913_v34 = vld [vmem:[#allocation3 + $0x78] sm:$0xf0]  ;;  %v3614_v37 = vld [vmem:[#allocation3 + $0xf4] sm:$0xf]  ;;  %v3159_v41 = vld [vmem:[#allocation3 + $0x260] sm:$0xf]  ;;  %v3232_v42 = vor.u32 %v3679_v32, %v3231_v30 }
  0x9b   : > { %1227 = vmatpush.bf16.msra.mxu1 %v2936_v5  ;;  %v2977_v38 = vld [vmem:[#allocation3 + $0xf8] sm:$0xf0]  ;;  %v2916_v43 = vor.u32 %v3598_v33, %v2913_v34  ;;  %v3661_v44 = vld [vmem:[#allocation3 + $0x264] sm:$0xf0]  ;;  %v3223_v45 = vld [vmem:[#allocation3 + $0x2e0] sm:$0xf] }
  0x9c   : > { %1241 = vmatpush.bf16.msra.mxu2 %v3000_v6  ;;  %v3677_v46 = vld [vmem:[#allocation3 + $0x2e4] sm:$0xf0]  ;;  %v2980_v47 = vor.u32 %v3614_v37, %v2977_v38  ;;  %v3596_v48 = vld [vmem:[#allocation3 + $0x64] sm:$0xf]  ;;  %v2905_v49 = vld [vmem:[#allocation3 + $0x68] sm:$0xf0]  ;;  %v3160_v54 = vor.u32 %v3661_v44, %v3159_v41 }
  0x9d   : > { %1255 = vmatpush.bf16.msra.mxu3 %v3064_v10  ;;  %v3612_v50 = vld [vmem:[#allocation3 + $0xe4] sm:$0xf]  ;;  %v2969_v51 = vld [vmem:[#allocation3 + $0xe8] sm:$0xf0]  ;;  %v2831_v52 = vld [vmem:[%s4799_s0] sm:$0xf]  ;;  %v3224_v59 = vor.u32 %v3677_v46, %v3223_v45  ;;  %v2908_v60 = vor.u32 %v3596_v48, %v2905_v49 }
  0x9e   : > { %1214 = vmatpush.bf16.msra.mxu0 %v2864_v16  ;;  %v3581_v53 = vld [vmem:[%s4799_s0 + $0x14] sm:$0xf0]  ;;  %v3151_v55 = vld [vmem:[#allocation3 + $0x250] sm:$0xf]  ;;  %v3659_v56 = vld [vmem:[#allocation3 + $0x254] sm:$0xf0]  ;;  %v2972_v0 = vor.u32 %v3612_v50, %v2969_v51 }
  0x9f   : > { %1228 = vmatpush.bf16.msra.mxu1 %v2928_v19  ;;  %v3215_v57 = vld [vmem:[#allocation3 + $0x2d0] sm:$0xf]  ;;  %v4473_v58 = vor.u32 %v3581_v53, %v2831_v52  ;;  %v3675_v61 = vld [vmem:[#allocation3 + $0x2d4] sm:$0xf0]  ;;  %v3594_v62 = vld [vmem:[#allocation3 + $0x54] sm:$0xf]  ;;  %v3152_v8 = vor.u32 %v3659_v56, %v3151_v55 }
  0xa0   : > { %1242 = vmatpush.bf16.msra.mxu2 %v2992_v20  ;;  %v2897_v63 = vld [vmem:[#allocation3 + $0x58] sm:$0xf0]  ;;  %v3610_v1 = vld [vmem:[#allocation3 + $0xd4] sm:$0xf]  ;;  %v2833_v3 = vld [vmem:[%s4799_s0 + $0x18] sm:$0xf0]  ;;  %v3216_v12 = vor.u32 %v3675_v61, %v3215_v57 }
  0xa1   : > { %1256 = vmatpush.bf16.msra.mxu3 %v3056_v24  ;;  %v3578_v2 = vld [vmem:[%s4799_s0 + $0x4] sm:$0xf]  ;;  %v2961_v4 = vld [vmem:[#allocation3 + $0xd8] sm:$0xf0]  ;;  %v2839_v6 = vld [vmem:[%s4799_s0 + $0x8] sm:$0xf]  ;;  %v2900_v13 = vor.u32 %v3594_v62, %v2897_v63 }
  0xa2   : > { %1215 = vmatpush.bf16.msra.mxu0 %v2856_v31  ;;  %v4482_v5 = vor.u32 %v3578_v2, %v2833_v3  ;;  %v3582_v7 = vld [vmem:[%s4799_s0 + $0x1c] sm:$0xf0]  ;;  %v3143_v9 = vld [vmem:[#allocation3 + $0x240] sm:$0xf]  ;;  %v3657_v10 = vld [vmem:[#allocation3 + $0x244] sm:$0xf0]  ;;  %v2964_v17 = vor.u32 %v3610_v1, %v2961_v4 }
  0xa3   : > { %1229 = vmatpush.bf16.msra.mxu1 %v2920_v35  ;;  %v4490_v11 = vor.u32 %v3582_v7, %v2839_v6  ;;  %v3207_v14 = vld [vmem:[#allocation3 + $0x2c0] sm:$0xf]  ;;  %v3673_v15 = vld [vmem:[#allocation3 + $0x2c4] sm:$0xf0]  ;;  %v3592_v16 = vld [vmem:[#allocation3 + $0x44] sm:$0xf]  ;;  %v3144_v24 = vor.u32 %v3657_v10, %v3143_v9 }
  0xa4   : > { %1243 = vmatpush.bf16.msra.mxu2 %v2984_v36  ;;  %v2889_v18 = vld [vmem:[#allocation3 + $0x48] sm:$0xf0]  ;;  %v3579_v19 = vld [vmem:[%s4799_s0 + $0xc] sm:$0xf]  ;;  %v2841_v20 = vld [vmem:[%s4799_s0 + $0x20] sm:$0xf0]  ;;  %v3208_v25 = vor.u32 %v3673_v15, %v3207_v14 }
  0xa5   : > { %1257 = vmatpush.bf16.msra.mxu3 %v3048_v39  ;;  %1216 = vmatmul.bf16.vlgmr.msra.gmra.mxu0 %v4473_v58  ;;  %v3608_v21 = vld [vmem:[#allocation3 + $0xc4] sm:$0xf]  ;;  %v2953_v22 = vld [vmem:[#allocation3 + $0xc8] sm:$0xf0]  ;;  %v4500_v23 = vor.u32 %v3579_v19, %v2841_v20  ;;  %v2892_v26 = vor.u32 %v3592_v16, %v2889_v18  ;;  %v3135_v27 = vld [vmem:[#allocation3 + $0x230] sm:$0xf] }
  0xa6   : > { %1264 = vmatpush.bf16.msrb.mxu0 %v3168_v40  ;;  %1230 = vmatmul.bf16.vlgmr.msra.gmra.mxu1 %v4482_v5  ;;  %v3655_v28 = vld [vmem:[#allocation3 + $0x234] sm:$0xf0]  ;;  %v3199_v29 = vld [vmem:[#allocation3 + $0x2b0] sm:$0xf]  ;;  %v2956_v30 = vor.u32 %v3608_v21, %v2953_v22  ;;  %v3590_v32 = vld [vmem:[#allocation3 + $0x34] sm:$0xf] }
  0xa7   : > { %1278 = vmatpush.bf16.msrb.mxu1 %v3232_v42  ;;  %1244 = vmatmul.bf16.vlgmr.msra.gmra.mxu2 %v4490_v11  ;;  %v3671_v31 = vld [vmem:[#allocation3 + $0x2b4] sm:$0xf0]  ;;  %v2881_v33 = vld [vmem:[#allocation3 + $0x38] sm:$0xf0]  ;;  %v3606_v34 = vld [vmem:[#allocation3 + $0xb4] sm:$0xf]  ;;  %v3136_v36 = vor.u32 %v3655_v28, %v3135_v27 }
  0xa8   : > { %1292 = vmatpush.bf16.msrb.mxu2 %v2916_v43  ;;  %v2945_v35 = vld [vmem:[#allocation3 + $0xb8] sm:$0xf0]  ;;  %1258 = vmatmul.bf16.vlgmr.msra.gmra.mxu3 %v4500_v23  ;;  %v3200_v37 = vor.u32 %v3671_v31, %v3199_v29  ;;  %v2884_v38 = vor.u32 %v3590_v32, %v2881_v33  ;;  %v3127_v39 = vld [vmem:[#allocation3 + $0x220] sm:$0xf]  ;;  %v3653_v40 = vld [vmem:[#allocation3 + $0x224] sm:$0xf0] }
  0xa9   : > { %1306 = vmatpush.bf16.msrb.mxu3 %v2980_v47  ;;  %v3191_v41 = vld [vmem:[#allocation3 + $0x2a0] sm:$0xf]  ;;  %v2948_v42 = vor.u32 %v3606_v34, %v2945_v35  ;;  %v3669_v43 = vld [vmem:[#allocation3 + $0x2a4] sm:$0xf0]  ;;  %v3588_v44 = vld [vmem:[#allocation3 + $0x24] sm:$0xf]  ;;  %v3128_v48 = vor.u32 %v3653_v40, %v3127_v39 }
  0xaa   : > { %1265 = vmatpush.bf16.msrb.mxu0 %v3160_v54  ;;  %v2873_v45 = vld [vmem:[#allocation3 + $0x28] sm:$0xf0]  ;;  %v3604_v46 = vld [vmem:[#allocation3 + $0xa4] sm:$0xf]  ;;  %v3192_v49 = vor.u32 %v3669_v43, %v3191_v41  ;;  %v3119_v51 = vld [vmem:[#allocation3 + $0x210] sm:$0xf] }
  0xab   : > { %1279 = vmatpush.bf16.msrb.mxu1 %v3224_v59  ;;  %v2937_v47 = vld [vmem:[#allocation3 + $0xa8] sm:$0xf0]  ;;  %v2876_v50 = vor.u32 %v3588_v44, %v2873_v45  ;;  %v3651_v52 = vld [vmem:[#allocation3 + $0x214] sm:$0xf0]  ;;  %v3183_v53 = vld [vmem:[#allocation3 + $0x290] sm:$0xf] }
  0xac   : > { %1293 = vmatpush.bf16.msrb.mxu2 %v2908_v60  ;;  %v2940_v54 = vor.u32 %v3604_v46, %v2937_v47  ;;  %v3667_v55 = vld [vmem:[#allocation3 + $0x294] sm:$0xf0]  ;;  %v3586_v56 = vld [vmem:[#allocation3 + $0x14] sm:$0xf]  ;;  %v2865_v57 = vld [vmem:[#allocation3 + $0x18] sm:$0xf0]  ;;  %v3120_v61 = vor.u32 %v3651_v52, %v3119_v51 }
  0xad   : > { %1307 = vmatpush.bf16.msrb.mxu3 %v2972_v0  ;;  %v3602_v59 = vld [vmem:[#allocation3 + $0x94] sm:$0xf]  ;;  %v2929_v60 = vld [vmem:[#allocation3 + $0x98] sm:$0xf0]  ;;  %v3111_v62 = vld [vmem:[#allocation3 + $0x200] sm:$0xf]  ;;  %v3184_v1 = vor.u32 %v3667_v55, %v3183_v53  ;;  %v2868_v2 = vor.u32 %v3586_v56, %v2865_v57 }
  0xae   : > { %1266 = vmatpush.bf16.msrb.mxu0 %v3152_v8  ;;  %v3649_v63 = vld [vmem:[#allocation3 + $0x204] sm:$0xf0]  ;;  %v3175_v0 = vld [vmem:[#allocation3 + $0x280] sm:$0xf]  ;;  %v3584_v4 = vld [vmem:[#allocation3 + $0x4] sm:$0xf]  ;;  %v2932_v7 = vor.u32 %v3602_v59, %v2929_v60 }
  0xaf   : > { %1280 = vmatpush.bf16.msrb.mxu1 %v3216_v12  ;;  %v3665_v3 = vld [vmem:[#allocation3 + $0x284] sm:$0xf0]  ;;  %v2857_v6 = vld [vmem:[#allocation3 + $0x8] sm:$0xf0]  ;;  %v3600_v8 = vld [vmem:[#allocation3 + $0x84] sm:$0xf]  ;;  %v3112_v15 = vor.u32 %v3649_v63, %v3111_v62 }
  0xb0   : > { %1294 = vmatpush.bf16.msrb.mxu2 %v2900_v13  ;;  %v2921_v9 = vld [vmem:[#allocation3 + $0x88] sm:$0xf0]  ;;  %v3630_v10 = vld [vmem:[#allocation3 + $0x174] sm:$0xf]  ;;  %v3041_v12 = vld [vmem:[#allocation3 + $0x178] sm:$0xf0]  ;;  %v3176_v19 = vor.u32 %v3665_v3, %v3175_v0  ;;  %v2860_v20 = vor.u32 %v3584_v4, %v2857_v6 }
  0xb1   : > { %1308 = vmatpush.bf16.msrb.mxu3 %v2964_v17  ;;  %v3646_v13 = vld [vmem:[#allocation3 + $0x1f4] sm:$0xf]  ;;  %v3105_v14 = vld [vmem:[#allocation3 + $0x1f8] sm:$0xf0]  ;;  %v2847_v22 = vld [vmem:[%s4799_s0 + $0x10] sm:$0xf] }
  0xb2   : > { %1267 = vmatpush.bf16.msrb.mxu0 %v3144_v24  ;;  %v3662_v16 = vld [vmem:[#allocation3 + $0x274] sm:$0xf]  ;;  %v3169_v17 = vld [vmem:[#allocation3 + $0x278] sm:$0xf0]  ;;  %v3583_v24 = vld [vmem:[%s4799_s0 + $0x24] sm:$0xf0]  ;;  %v3108_v29 = vor.u32 %v3646_v13, %v3105_v14 }
  0xb3   : > { %1281 = vmatpush.bf16.msrb.mxu1 %v3208_v25  ;;  %v3678_v18 = vld [vmem:[#allocation3 + $0x2f4] sm:$0xf]  ;;  %v3233_v21 = vld [vmem:[#allocation3 + $0x2f8] sm:$0xf0]  ;;  %v2924_v25 = vor.u32 %v3600_v8, %v2921_v9  ;;  %v3580_v27 = vld [vmem:[%s4799_s0 + $0x14] sm:$0xf]  ;;  %v4515_v35 = vor.u32 %v3583_v24, %v2847_v22 }
  0xb4   : > { %1295 = vmatpush.bf16.msrb.mxu2 %v2892_v26  ;;  %v3044_v26 = vor.u32 %v3630_v10, %v3041_v12  ;;  %v2849_v28 = vld [vmem:[%s4799_s0 + $0x28] sm:$0xf0]  ;;  %v3628_v31 = vld [vmem:[#allocation3 + $0x164] sm:$0xf]  ;;  %v3033_v32 = vld [vmem:[#allocation3 + $0x168] sm:$0xf0]  ;;  %v3236_v34 = vor.u32 %v3678_v18, %v3233_v21 }
  0xb5   : > { %1309 = vmatpush.bf16.msrb.mxu3 %v2956_v30  ;;  %v3172_v30 = vor.u32 %v3662_v16, %v3169_v17  ;;  %v3644_v33 = vld [vmem:[#allocation3 + $0x1e4] sm:$0xf]  ;;  %v4517_v39 = vor.u32 %v3580_v27, %v2849_v28  ;;  %v3225_v41 = vld [vmem:[#allocation3 + $0x2e8] sm:$0xf0]  ;;  %v3626_v45 = vld [vmem:[#allocation3 + $0x154] sm:$0xf] }
  0xb6   : > { %1268 = vmatpush.bf16.msrb.mxu0 %v3136_v36  ;;  %v3097_v36 = vld [vmem:[#allocation3 + $0x1e8] sm:$0xf0]  ;;  %v3676_v40 = vld [vmem:[#allocation3 + $0x2e4] sm:$0xf]  ;;  %v3025_v46 = vld [vmem:[#allocation3 + $0x158] sm:$0xf0] }
  0xb7   : > { %1282 = vmatpush.bf16.msrb.mxu1 %v3200_v37  ;;  %v3660_v37 = vld [vmem:[#allocation3 + $0x264] sm:$0xf]  ;;  %v3100_v43 = vor.u32 %v3644_v33, %v3097_v36  ;;  %v3642_v47 = vld [vmem:[#allocation3 + $0x1d4] sm:$0xf]  ;;  %v3153_v51 = vld [vmem:[#allocation3 + $0x258] sm:$0xf0] }
  0xb8   : > { %1296 = vmatpush.bf16.msrb.mxu2 %v2884_v38  ;;  %v3161_v38 = vld [vmem:[#allocation3 + $0x268] sm:$0xf0]  ;;  %v3674_v52 = vld [vmem:[#allocation3 + $0x2d4] sm:$0xf]  ;;  %v3217_v53 = vld [vmem:[#allocation3 + $0x2d8] sm:$0xf0] }
  0xb9   : > { %1310 = vmatpush.bf16.msrb.mxu3 %v2948_v42  ;;  %v3036_v42 = vor.u32 %v3628_v31, %v3033_v32  ;;  %v3164_v44 = vor.u32 %v3660_v37, %v3161_v38  ;;  %v3624_v55 = vld [vmem:[#allocation3 + $0x144] sm:$0xf]  ;;  %v3017_v59 = vld [vmem:[#allocation3 + $0x148] sm:$0xf0]  ;;  %v3622_v4 = vld [vmem:[#allocation3 + $0x134] sm:$0xf] }
  0xba   : > { %1269 = vmatpush.bf16.msrb.mxu0 %v3128_v48  ;;  %v3228_v48 = vor.u32 %v3676_v40, %v3225_v41  ;;  %v3640_v60 = vld [vmem:[#allocation3 + $0x1c4] sm:$0xf]  ;;  %v3081_v62 = vld [vmem:[#allocation3 + $0x1c8] sm:$0xf0]  ;;  %v3009_v6 = vld [vmem:[#allocation3 + $0x138] sm:$0xf0] }
  0xbb   : > { %1283 = vmatpush.bf16.msrb.mxu1 %v3192_v49  ;;  %v3089_v49 = vld [vmem:[#allocation3 + $0x1d8] sm:$0xf0]  ;;  %v3656_v63 = vld [vmem:[#allocation3 + $0x244] sm:$0xf]  ;;  %v3145_v0 = vld [vmem:[#allocation3 + $0x248] sm:$0xf0]  ;;  %v3084_v3 = vor.u32 %v3640_v60, %v3081_v62 }
  0xbc   : > { %1297 = vmatpush.bf16.msrb.mxu2 %v2876_v50  ;;  %v3658_v50 = vld [vmem:[#allocation3 + $0x254] sm:$0xf]  ;;  %v3092_v56 = vor.u32 %v3642_v47, %v3089_v49  ;;  %v3073_v9 = vld [vmem:[#allocation3 + $0x1b8] sm:$0xf0]  ;;  %v3620_v18 = vld [vmem:[#allocation3 + $0x124] sm:$0xf] }
  0xbd   : > { %1311 = vmatpush.bf16.msrb.mxu3 %v2940_v54  ;;  %v3028_v54 = vor.u32 %v3626_v45, %v3025_v46  ;;  %v3156_v57 = vor.u32 %v3658_v50, %v3153_v51  ;;  %v3654_v10 = vld [vmem:[#allocation3 + $0x234] sm:$0xf]  ;;  %v3137_v12 = vld [vmem:[#allocation3 + $0x238] sm:$0xf0]  ;;  %v3065_v22 = vld [vmem:[#allocation3 + $0x1a8] sm:$0xf0] }
  0xbe   : > { %1270 = vmatpush.bf16.msrb.mxu0 %v3120_v61  ;;  %v3220_v61 = vor.u32 %v3674_v52, %v3217_v53  ;;  %v3670_v13 = vld [vmem:[#allocation3 + $0x2b4] sm:$0xf]  ;;  %v3201_v14 = vld [vmem:[#allocation3 + $0x2b8] sm:$0xf0]  ;;  %v3140_v17 = vor.u32 %v3654_v10, %v3137_v12  ;;  %v3652_v24 = vld [vmem:[#allocation3 + $0x224] sm:$0xf] }
  0xbf   : > { %1284 = vmatpush.bf16.msrb.mxu1 %v3184_v1  ;;  %v3672_v1 = vld [vmem:[#allocation3 + $0x2c4] sm:$0xf]  ;;  %v3204_v21 = vor.u32 %v3670_v13, %v3201_v14  ;;  %v3193_v27 = vld [vmem:[#allocation3 + $0x2a8] sm:$0xf0]  ;;  %v3618_v31 = vld [vmem:[#allocation3 + $0x114] sm:$0xf] }
  0xc0   : > { %1298 = vmatpush.bf16.msrb.mxu2 %v2868_v2  ;;  %v3020_v2 = vor.u32 %v3624_v55, %v3017_v59  ;;  %v2993_v32 = vld [vmem:[#allocation3 + $0x118] sm:$0xf0]  ;;  %v3634_v33 = vld [vmem:[#allocation3 + $0x194] sm:$0xf]  ;;  %v3616_v45 = vld [vmem:[#allocation3 + $0x104] sm:$0xf] }
  0xc1   : > { %1312 = vmatpush.bf16.msrb.mxu3 %v2932_v7  ;;  %v3638_v7 = vld [vmem:[#allocation3 + $0x1b4] sm:$0xf]  ;;  %v3057_v36 = vld [vmem:[#allocation3 + $0x198] sm:$0xf0]  ;;  %v2985_v46 = vld [vmem:[#allocation3 + $0x108] sm:$0xf0] }
  0xc2   : > { %1271 = vmatpush.bf16.msrb.mxu0 %v3112_v15  ;;  %v3012_v15 = vor.u32 %v3622_v4, %v3009_v6  ;;  %v3076_v16 = vor.u32 %v3638_v7, %v3073_v9  ;;  %v3650_v37 = vld [vmem:[#allocation3 + $0x214] sm:$0xf]  ;;  %v3121_v38 = vld [vmem:[#allocation3 + $0x218] sm:$0xf0]  ;;  %v3632_v47 = vld [vmem:[#allocation3 + $0x184] sm:$0xf] }
  0xc3   : > { %1285 = vmatpush.bf16.msrb.mxu1 %v3176_v19  ;;  %v3001_v19 = vld [vmem:[#allocation3 + $0x128] sm:$0xf0]  ;;  %v3666_v40 = vld [vmem:[#allocation3 + $0x294] sm:$0xf]  ;;  %v3185_v41 = vld [vmem:[#allocation3 + $0x298] sm:$0xf0] }
  0xc4   : > { %1299 = vmatpush.bf16.msrb.mxu2 %v2860_v20  ;;  %v3636_v20 = vld [vmem:[#allocation3 + $0x1a4] sm:$0xf]  ;;  %v3004_v28 = vor.u32 %v3620_v18, %v3001_v19  ;;  %v3049_v49 = vld [vmem:[#allocation3 + $0x188] sm:$0xf0]  ;;  %v3687_v59 = vld [vmem:[#allocation6 + $0x38] sm:$0xff] }
  0xc5   : > { %1313 = vmatpush.bf16.msrb.mxu3 %v2924_v25  ;;  %1272 = vmatmul.bf16.vlgmr.msrb.gmra.mxu0 %v4515_v35  ;;  %v3129_v25 = vld [vmem:[#allocation3 + $0x228] sm:$0xf0]  ;;  %v3648_v50 = vld [vmem:[#allocation3 + $0x204] sm:$0xf]  ;;  %v3052_v55 = vor.u32 %v3632_v47, %v3049_v49  ;;  %v3686_v60 = vld [vmem:[#allocation6 + $0x30] sm:$0xff] }
  0xc6   : > { %1320 = vmatpush.bf16.msra.mxu0 %v3044_v26  ;;  %1286 = vmatmul.bf16.vlgmr.msrb.gmra.mxu1 %v4517_v39  ;;  %v3668_v26 = vld [vmem:[#allocation3 + $0x2a4] sm:$0xf]  ;;  %v3113_v51 = vld [vmem:[#allocation3 + $0x208] sm:$0xf0]  ;;  %v3694_v4 = vld [vmem:[#allocation6 + $0x70] sm:$0xff] }
  0xc7   : > { %1334 = vmatpush.bf16.msra.mxu1 %v3108_v29  ;;  %1300 = vmatmul.bf16.vlgmr.msrb.gmra.mxu2 %v4473_v58  ;;  %v3209_v58 = vld [vmem:[#allocation3 + $0x2c8] sm:$0xf0]  ;;  %v3068_v29 = vor.u32 %v3636_v20, %v3065_v22  ;;  %v3664_v52 = vld [vmem:[#allocation3 + $0x284] sm:$0xf] }
  0xc8   : > { %1348 = vmatpush.bf16.msra.mxu2 %v3172_v30  ;;  %1314 = vmatmul.bf16.vlgmr.msrb.gmra.mxu3 %v4482_v5  ;;  %v3148_v5 = vor.u32 %v3656_v63, %v3145_v0  ;;  %v3212_v8 = vor.u32 %v3672_v1, %v3209_v58  ;;  %v3132_v30 = vor.u32 %v3652_v24, %v3129_v25  ;;  %v3177_v53 = vld [vmem:[#allocation3 + $0x288] sm:$0xf0]  ;;  %v3684_v62 = vld [vmem:[#allocation6 + $0x20] sm:$0xff]  ;;  %v3683_v63 = vld [vmem:[#allocation6 + $0x18] sm:$0xff] }
  0xc9   : > { %1362 = vmatpush.bf16.msra.mxu3 %v3236_v34  ;;  %v3196_v34 = vor.u32 %v3668_v26, %v3193_v27  ;;  %v3682_v0 = vld [vmem:[#allocation6 + $0x10] sm:$0xff]  ;;  %v3681_v1 = vld [vmem:[#allocation6 + $0x8] sm:$0xff]  ;;  %v3680_v58 = vld [vmem:[#allocation6] sm:$0xff] }
  0xca   : > { %1321 = vmatpush.bf16.msra.mxu0 %v3036_v42  ;;  %v2996_v42 = vor.u32 %v3618_v31, %v2993_v32  ;;  %v3692_v18 = vld [vmem:[#allocation6 + $0x60] sm:$0xff]  ;;  %v3691_v25 = vld [vmem:[#allocation6 + $0x58] sm:$0xff] }
  0xcb   : > { %1335 = vmatpush.bf16.msra.mxu1 %v3100_v43  ;;  %v3060_v43 = vor.u32 %v3634_v33, %v3057_v36 }
  0xcc   : > { %1349 = vmatpush.bf16.msra.mxu2 %v3164_v44  ;;  %v3124_v44 = vor.u32 %v3650_v37, %v3121_v38 }
  0xcd   : > { %1363 = vmatpush.bf16.msra.mxu3 %v3228_v48  ;;  %v3188_v48 = vor.u32 %v3666_v40, %v3185_v41  ;;  %v3688_v41 = vld [vmem:[#allocation6 + $0x40] sm:$0xff] }
  0xce   : > { %1322 = vmatpush.bf16.msra.mxu0 %v3028_v54  ;;  %v2988_v54 = vor.u32 %v3616_v45, %v2985_v46 }
  0xcf   : > { %1336 = vmatpush.bf16.msra.mxu1 %v3092_v56  ;;  %v3116_v56 = vor.u32 %v3648_v50, %v3113_v51 }
  0xd0   : > { %1350 = vmatpush.bf16.msra.mxu2 %v3156_v57  ;;  %v3180_v57 = vor.u32 %v3664_v52, %v3177_v53 }
  0xd1   : > { %1364 = vmatpush.bf16.msra.mxu3 %v3220_v61  ;;  %v3685_v61 = vld [vmem:[#allocation6 + $0x28] sm:$0xff] }
  0xd2   : > { %1323 = vmatpush.bf16.msra.mxu0 %v3020_v2  ;;  %v3695_v2 = vld [vmem:[#allocation6 + $0x78] sm:$0xff] }
  0xd3   : > { %1337 = vmatpush.bf16.msra.mxu1 %v3084_v3 }
  0xd4   : > { %1351 = vmatpush.bf16.msra.mxu2 %v3148_v5 }
  0xd5   : > { %1365 = vmatpush.bf16.msra.mxu3 %v3212_v8 }
  0xd6   : > { %1324 = vmatpush.bf16.msra.mxu0 %v3012_v15  ;;  %v3693_v15 = vld [vmem:[#allocation6 + $0x68] sm:$0xff] }
  0xd7   : > { %1338 = vmatpush.bf16.msra.mxu1 %v3076_v16 }
  0xd8   : > { %1352 = vmatpush.bf16.msra.mxu2 %v3140_v17 }
  0xd9   : > { %1366 = vmatpush.bf16.msra.mxu3 %v3204_v21 }
  0xda   : > { %1325 = vmatpush.bf16.msra.mxu0 %v3004_v28 }
  0xdb   : > { %1339 = vmatpush.bf16.msra.mxu1 %v3068_v29 }
  0xdc   : > { %1353 = vmatpush.bf16.msra.mxu2 %v3132_v30  ;;  %v3690_v30 = vld [vmem:[#allocation6 + $0x50] sm:$0xff] }
  0xdd   : > { %1367 = vmatpush.bf16.msra.mxu3 %v3196_v34  ;;  %v3689_v34 = vld [vmem:[#allocation6 + $0x48] sm:$0xff] }
  0xde   : > { %1326 = vmatpush.bf16.msra.mxu0 %v2996_v42 }
  0xdf   : > { %1340 = vmatpush.bf16.msra.mxu1 %v3060_v43 }
  0xe0   : > { %1354 = vmatpush.bf16.msra.mxu2 %v3124_v44 }
  0xe1   : > { %1368 = vmatpush.bf16.msra.mxu3 %v3188_v48 }
  0xe2   : > { %1327 = vmatpush.bf16.msra.mxu0 %v2988_v54 }
  0xe3   : > { %1341 = vmatpush.bf16.msra.mxu1 %v3052_v55 }
  0xe4   : > { %1355 = vmatpush.bf16.msra.mxu2 %v3116_v56 }
  0xe5   : > { %1369 = vmatpush.bf16.msra.mxu3 %v3180_v57  ;;  %1328 = vmatmul.bf16.vlgmr.msra.gmra.mxu0 %v4490_v11  ;;  %v4530_v11 = vld [vmem:[%s4835_s26] sm:$0x3] }
  0xe6   : > { %1342 = vmatmul.bf16.vlgmr.msra.gmra.mxu1 %v4500_v23  ;;  %1522 = vmatpush.bf16.msrb.mxu0 %v3687_v59  ;;  %v695_v43 = vperm.slane %v4530_v11, 1 }
  0xe7   : > { %1356 = vmatmul.bf16.vlgmr.msra.gmra.mxu2 %v4515_v35  ;;  %1536 = vmatpush.bf16.msrb.mxu1 %v3695_v2 }
  0xe8   : > { %1370 = vmatmul.bf16.vlgmr.msra.gmra.mxu3 %v4517_v39  ;;  %v694_v39 = vperm.slane %v4530_v11, 0 }
  0xea   : > { %1523 = vmatpush.bf16.msrb.mxu0 %v3686_v60 }
  0xeb   : > { %1537 = vmatpush.bf16.msrb.mxu1 %v3694_v4 }
  0xee   : > { %1524 = vmatpush.bf16.msrb.mxu0 %v3685_v61 }
  0xef   : > { %1538 = vmatpush.bf16.msrb.mxu1 %v3693_v15 }
  0xf2   : > { %1525 = vmatpush.bf16.msrb.mxu0 %v3684_v62 }
  0xf3   : > { %1539 = vmatpush.bf16.msrb.mxu1 %v3692_v18 }
  0xf6   : > { %1526 = vmatpush.bf16.msrb.mxu0 %v3683_v63 }
  0xf7   : > { %1540 = vmatpush.bf16.msrb.mxu1 %v3691_v25 }
  0xfa   : > { %1527 = vmatpush.bf16.msrb.mxu0 %v3682_v0 }
  0xfb   : > { %1541 = vmatpush.bf16.msrb.mxu1 %v3690_v30 }
  0xfe   : > { %1528 = vmatpush.bf16.msrb.mxu0 %v3681_v1 }
  0xff   : > { %1542 = vmatpush.bf16.msrb.mxu1 %v3689_v34 }
 0x102   : > { %1529 = vmatpush.bf16.msrb.mxu0 %v3680_v58 }
 0x103   : > { %1543 = vmatpush.bf16.msrb.mxu1 %v3688_v41 }
 0x122   : > { %v1217_v23 = vpop.f32.mrf.mxu0 }
 0x123   : > { %v1231_v35 = vpop.f32.mrf.mxu1  ;;  %v1218_v3 = vadd.f32 %v1217_v23, %v694_v39 }
 0x125   : > { %v1232_v7 = vadd.f32 %v1231_v35, %v1218_v3 }
 0x12a   : > { %v1245_v5 = vpop.f32.mrf.mxu2  ;;  %v1219_v6 = vpop.f32.mrf.mxu0 }
 0x12b   : > { %v1233_v8 = vpop.f32.mrf.mxu1  ;;  %v1259_v9 = vpop.f32.mrf.mxu3  ;;  %v1220_v10 = vadd.f32 %v1219_v6, %v694_v39  ;;  %v1246_v12 = vadd.f32 %v1245_v5, %v1232_v7  ;;  %v3855_v5 = vld [vmem:[%s4836_s28] ss:$0 sm:$0xff] }
 0x12d   : > { %v1234_v13 = vadd.f32 %v1233_v8, %v1220_v10  ;;  %v1260_v16 = vadd.f32 %v1259_v9, %v1246_v12 }
 0x132   : > { %v1247_v14 = vpop.f32.mrf.mxu2 }
 0x133   : > { %v1248_v20 = vadd.f32 %v1247_v14, %v1234_v13  ;;  %v1261_v21 = vpop.f32.mrf.mxu3 }
 0x135   : > { %v1262_v24 = vadd.f32 %v1261_v21, %v1248_v20 }
 0x142   : > { %v1273_v17 = vpop.f32.mrf.mxu0 }
 0x143   : > { %v1287_v19 = vpop.f32.mrf.mxu1  ;;  %v1274_v22 = vadd.f32 %v1273_v17, %v1260_v16 }
 0x145   : > { %v1288_v26 = vadd.f32 %v1287_v19, %v1274_v22 }
 0x147   : > { %v1380_v31 = vmul.f32 0.1, %v1288_v26  ;;  %vm1376_vm0 = vcmp.ge.f32.partialorder %v1288_v26, 0.0 }
 0x149   : > { %v1384_v36 = vsel %vm1376_vm0, %v1288_v26, %v1380_v31 }
 0x14a   : > { %v1275_v27 = vpop.f32.mrf.mxu0  ;;  %v1301_v40 = vpop.f32.mrf.mxu2 }
 0x14b   : > { %v1276_v28 = vadd.f32 %v1275_v27, %v1262_v24  ;;  %v1289_v29 = vpop.f32.mrf.mxu1  ;;  %v1315_v42 = vpop.f32.mrf.mxu3  ;;  %v1302_v44 = vadd.f32 %v1301_v40, %v695_v43 }
 0x14d   : > { %v1290_v32 = vadd.f32 %v1289_v29, %v1276_v28  ;;  %v1316_v48 = vadd.f32 %v1315_v42, %v1302_v44 }
 0x14f   : > { %vm1378_vm1 = vcmp.ge.f32.partialorder %v1290_v32, 0.0  ;;  %v1382_v33 = vmul.f32 0.1, %v1290_v32 }
 0x151   : > { %v1386_v37 = vsel %vm1378_vm1, %v1290_v32, %v1382_v33 }
 0x152   : > { %v1388_v38 = vpack.c.bf16 %v1386_v37, %v1384_v36  ;;  %v1303_v45 = vpop.f32.mrf.mxu2 }
 0x153   : > { %v1317_v46 = vpop.f32.mrf.mxu3  ;;  %v1304_v50 = vadd.f32 %v1303_v45, %v695_v43 }
 0x154   : > { %1530 = vmatmul.bf16.vlgmr.msrb.gmra.mxu0 %v1388_v38 }
 0x155   : > { %v1318_v53 = vadd.f32 %v1317_v46, %v1304_v50 }
 0x162   : > { %v1329_v47 = vpop.f32.mrf.mxu0 }
 0x163   : > { %v1343_v49 = vpop.f32.mrf.mxu1  ;;  %v1330_v51 = vadd.f32 %v1329_v47, %v1316_v48 }
 0x165   : > { %v1344_v54 = vadd.f32 %v1343_v49, %v1330_v51 }
 0x16a   : > { %v1357_v52 = vpop.f32.mrf.mxu2  ;;  %v1331_v56 = vpop.f32.mrf.mxu0 }
 0x16b   : > { %v1371_v55 = vpop.f32.mrf.mxu3  ;;  %v1358_v57 = vadd.f32 %v1357_v52, %v1344_v54  ;;  %v1332_v59 = vadd.f32 %v1331_v56, %v1318_v53  ;;  %v1345_v60 = vpop.f32.mrf.mxu1 }
 0x16d   : > { %v1372_v61 = vadd.f32 %v1371_v55, %v1358_v57  ;;  %v1346_v62 = vadd.f32 %v1345_v60, %v1332_v59 }
 0x16f   : > { %v1381_v11 = vmul.f32 0.1, %v1372_v61  ;;  %vm1377_vm2 = vcmp.ge.f32.partialorder %v1372_v61, 0.0 }
 0x171   : > { %v1385_v39 = vsel %vm1377_vm2, %v1372_v61, %v1381_v11 }
 0x172   : > { %v1359_v63 = vpop.f32.mrf.mxu2 }
 0x173   : > { %v1360_v0 = vadd.f32 %v1359_v63, %v1346_v62  ;;  %v1373_v1 = vpop.f32.mrf.mxu3 }
 0x175   : > { %v1374_v23 = vadd.f32 %v1373_v1, %v1360_v0 }
 0x177   : > { %vm1379_vm3 = vcmp.ge.f32.partialorder %v1374_v23, 0.0  ;;  %v1383_v35 = vmul.f32 0.1, %v1374_v23 }
 0x179   : > { %v1387_v58 = vsel %vm1379_vm3, %v1374_v23, %v1383_v35 }
 0x17a   : > { %v1389_v2 = vpack.c.bf16 %v1387_v58, %v1385_v39 }
 0x17c   : > { %1544 = vmatmul.bf16.vlgmr.msrb.gmra.mxu1 %v1389_v2 }
 0x1d1   : > { %v1531_v3 = vpop.f32.mrf.mxu0 }
 0x1d2   : > { %v1532_v4 = vadd.f32 %v3855_v5, %v1531_v3 }
 0x1d9   : > { %v1533_v8 = vpop.f32.mrf.mxu0 }
 0x1da   : > { %v1534_v9 = vadd.f32 %v3855_v5, %v1533_v8 }
 0x1f9   : > { %v1545_v6 = vpop.f32.mrf.mxu1 }
 0x1fa   : > { %v1546_v7 = vadd.f32 %v1545_v6, %v1532_v4 }
 0x1fc   : > { %1550 = vst [vmem:[#allocation2] sm:$0xff] %v1546_v7 }
 0x201   : > { %v1547_v10 = vpop.f32.mrf.mxu1 }
 0x202   : > { %v1548_v12 = vadd.f32 %v1547_v10, %v1534_v9 }
 0x204   : > { %1551 = vst [vmem:[#allocation2 + $0x8] sm:$0xff] %v1548_v12 }
 0x205 PF: > { %v3717_v13 = vld [vmem:[%s4446_s16 + $0xac] sm:$0xf]  ;;  %v3389_v14 = vld [vmem:[%s4446_s16 + $0xb4] sm:$0xf0]  ;;  %v3714_v15 = vld [vmem:[%s4446_s16 + $0x94] sm:$0xf] }
 0x206   : > { %v3392_v16 = vor.u32 %v3717_v13, %v3389_v14  ;;  %v3377_v17 = vld [vmem:[%s4446_s16 + $0x9c] sm:$0xf0]  ;;  %v3387_v18 = vld [vmem:[%s4446_s16 + $0xa8] sm:$0xf]  ;;  %v3718_v19 = vld [vmem:[%s4446_s16 + $0xb0] sm:$0xf0] }
 0x207   : > { %v3380_v20 = vor.u32 %v3714_v15, %v3377_v17  ;;  %v3388_v21 = vor.u32 %v3718_v19, %v3387_v18  ;;  %v3375_v22 = vld [vmem:[%s4446_s16 + $0x90] sm:$0xf]  ;;  %v3715_v24 = vld [vmem:[%s4446_s16 + $0x98] sm:$0xf0]  ;;  %v3365_v26 = vld [vmem:[%s4446_s16 + $0x84] sm:$0xf0] }
 0x208   : > { %1747 = vmatpush.bf16.msra.mxu1 %v3392_v16  ;;  %v3711_v25 = vld [vmem:[%s4446_s16 + $0x7c] sm:$0xf]  ;;  %v3376_v27 = vor.u32 %v3715_v24, %v3375_v22  ;;  %v3363_v28 = vld [vmem:[%s4446_s16 + $0x78] sm:$0xf]  ;;  %v3712_v29 = vld [vmem:[%s4446_s16 + $0x80] sm:$0xf0] }
 0x209   : > { %1733 = vmatpush.bf16.msra.mxu0 %v3388_v21  ;;  %v3368_v30 = vor.u32 %v3711_v25, %v3365_v26  ;;  %v3708_v31 = vld [vmem:[%s4446_s16 + $0x64] sm:$0xf]  ;;  %v3353_v32 = vld [vmem:[%s4446_s16 + $0x6c] sm:$0xf0]  ;;  %v3364_v33 = vor.u32 %v3712_v29, %v3363_v28  ;;  %v3351_v34 = vld [vmem:[%s4446_s16 + $0x60] sm:$0xf] }
 0x20a   : > { %v3709_v36 = vld [vmem:[%s4446_s16 + $0x68] sm:$0xf0]  ;;  %v3356_v37 = vor.u32 %v3708_v31, %v3353_v32  ;;  %v3395_v40 = vld [vmem:[%s4446_s16 + $0xb0] sm:$0xf]  ;;  %v3719_v41 = vld [vmem:[%s4446_s16 + $0xb8] sm:$0xf0] }
 0x20b   : > { %v3705_v38 = vld [vmem:[%s4446_s16 + $0x4c] sm:$0xf]  ;;  %v3341_v42 = vld [vmem:[%s4446_s16 + $0x54] sm:$0xf0]  ;;  %v3396_v43 = vor.u32 %v3719_v41, %v3395_v40  ;;  %v3716_v45 = vld [vmem:[%s4446_s16 + $0xa0] sm:$0xf0]  ;;  %v3352_v46 = vor.u32 %v3709_v36, %v3351_v34 }
 0x20c   : > { %1748 = vmatpush.bf16.msra.mxu1 %v3380_v20  ;;  %v3383_v44 = vld [vmem:[%s4446_s16 + $0x98] sm:$0xf]  ;;  %v3339_v47 = vld [vmem:[%s4446_s16 + $0x48] sm:$0xf]  ;;  %v3706_v48 = vld [vmem:[%s4446_s16 + $0x50] sm:$0xf0]  ;;  %v3344_v50 = vor.u32 %v3705_v38, %v3341_v42 }
 0x20d   : > { %1734 = vmatpush.bf16.msra.mxu0 %v3376_v27  ;;  %1761 = vmatpush.bf16.msra.mxu2 %v3396_v43  ;;  %v3384_v49 = vor.u32 %v3716_v45, %v3383_v44  ;;  %v3702_v51 = vld [vmem:[%s4446_s16 + $0x34] sm:$0xf]  ;;  %v3371_v52 = vld [vmem:[%s4446_s16 + $0x80] sm:$0xf]  ;;  %v3713_v53 = vld [vmem:[%s4446_s16 + $0x88] sm:$0xf0]  ;;  %v3340_v57 = vor.u32 %v3706_v48, %v3339_v47  ;;  %v1554_v45 = vlaneseq }
 0x20e   : > { %v3329_v54 = vld [vmem:[%s4446_s16 + $0x3c] sm:$0xf0]  ;;  %v3327_v55 = vld [vmem:[%s4446_s16 + $0x30] sm:$0xf]  ;;  %v3703_v56 = vld [vmem:[%s4446_s16 + $0x38] sm:$0xf0]  ;;  %v3372_v60 = vor.u32 %v3713_v53, %v3371_v52 }
 0x20f   : > { %v3359_v59 = vld [vmem:[%s4446_s16 + $0x68] sm:$0xf]  ;;  %v3332_v61 = vor.u32 %v3702_v51, %v3329_v54  ;;  %v3710_v62 = vld [vmem:[%s4446_s16 + $0x70] sm:$0xf0]  ;;  %v3699_v63 = vld [vmem:[%s4446_s16 + $0x1c] sm:$0xf]  ;;  %v3328_v1 = vor.u32 %v3703_v56, %v3327_v55 }
 0x210   : > { %1749 = vmatpush.bf16.msra.mxu1 %v3368_v30  ;;  %v3317_v0 = vld [vmem:[%s4446_s16 + $0x24] sm:$0xf0]  ;;  %v3315_v11 = vld [vmem:[%s4446_s16 + $0x18] sm:$0xf]  ;;  %v3700_v23 = vld [vmem:[%s4446_s16 + $0x20] sm:$0xf0]  ;;  %v3360_v35 = vor.u32 %v3710_v62, %v3359_v59 }
 0x211   : > { %1735 = vmatpush.bf16.msra.mxu0 %v3364_v33  ;;  %1762 = vmatpush.bf16.msra.mxu2 %v3384_v49  ;;  %v3320_v39 = vor.u32 %v3699_v63, %v3317_v0  ;;  %v3347_v58 = vld [vmem:[%s4446_s16 + $0x50] sm:$0xf]  ;;  %v3707_v2 = vld [vmem:[%s4446_s16 + $0x58] sm:$0xf0]  ;;  %v3696_v3 = vld [vmem:[%s4446_s16 + $0x4] sm:$0xf]  ;;  %v3316_v4 = vor.u32 %v3700_v23, %v3315_v11 }
 0x212   : > { %v3305_v5 = vld [vmem:[%s4446_s16 + $0xc] sm:$0xf0]  ;;  %v3303_v7 = vld [vmem:[%s4446_s16] sm:$0xf]  ;;  %v3697_v8 = vld [vmem:[%s4446_s16 + $0x8] sm:$0xf0]  ;;  %v3348_v9 = vor.u32 %v3707_v2, %v3347_v58 }
 0x213   : > { %v4577_v6 = vld [vmem:[#allocation2] sm:$0xff]  ;;  %v3308_v10 = vor.u32 %v3696_v3, %v3305_v5  ;;  %v4581_v12 = vld [vmem:[#allocation2 + $0x8] sm:$0xff]  ;;  %v3704_v14 = vld [vmem:[%s4446_s16 + $0x40] sm:$0xf0]  ;;  %v3304_v15 = vor.u32 %v3697_v8, %v3303_v7  ;;  %vm1775_vm4 = vcmask 261120   ;;  %s4202_s14 = smov 96  }
 0x214   : > { %1750 = vmatpush.bf16.msra.mxu1 %v3356_v37  ;;  %v3335_v13 = vld [vmem:[%s4446_s16 + $0x38] sm:$0xf]  ;;  %v1564_v16 = vpack.c.bf16 %v4581_v12, %v4577_v6  ;;  %v3323_v18 = vld [vmem:[%s4446_s16 + $0x20] sm:$0xf]  ;;  %v3701_v19 = vld [vmem:[%s4446_s16 + $0x28] sm:$0xf0] }
 0x215   : > { %1736 = vmatpush.bf16.msra.mxu0 %v3352_v46  ;;  %1763 = vmatpush.bf16.msra.mxu2 %v3372_v60  ;;  %v3336_v17 = vor.u32 %v3704_v14, %v3335_v13  ;;  %v3324_v20 = vor.u32 %v3701_v19, %v3323_v18  ;;  %v3311_v21 = vld [vmem:[%s4446_s16 + $0x8] sm:$0xf]  ;;  %v3698_v22 = vld [vmem:[%s4446_s16 + $0x10] sm:$0xf0]  ;;  %v1597_v26 = vld [vmem:[%s4457_s1] sm:$0x7] }
 0x216   : > { %v3312_v24 = vor.u32 %v3698_v22, %v3311_v21  ;;  %v1600_v27 = vperm.slane %v1597_v26, 1  ;;  %v1599_v30 = vperm.slane %v1597_v26, 0  ;;  %v1601_v37 = vperm.slane %v1597_v26, 2  ;;  %s4203_s16 = smov 64   ;;  %s4204_s1 = smov 32  }
 0x217   : > { %v1555_v46 = vshrl.u32 %v1554_v45, 7  ;;  %v1558_v47 = vand.u32 127, %v1554_v45  ;;  %vm1813_vm6 = vcmask 130048   ;;  %vm2187_vm8 = vcmask 523264   ;;  %p3539_p8 = scmp.ne.s32.totalorder %s4291_s25, 3 }
 0x218   : > { %1751 = vmatpush.bf16.msra.mxu1 %v3344_v50  ;;  %vm2190_vm9 = vcmask 785408   ;;  %s4842_s17 = sld [smem:[#allocation26_spill]] (!%p3539_p8) }
 0x219   : > { %1737 = vmatpush.bf16.msra.mxu0 %v3340_v57  ;;  %1764 = vmatpush.bf16.msra.mxu2 %v3360_v35  ;;  %v1559_v48 = vand.u32 4294967288, %v1555_v46  ;;  %v1561_v49 = vand.u32 4294967288, %v1558_v47  ;;  %v1556_v51 = vadd.s32 8, %v1555_v46 }
 0x21b   : > { %vm4614_vm5 = vcmp.eq.s32.totalorder %v1559_v48, %v1561_v49  ;;  %v1560_v55 = vand.u32 4294967288, %v1556_v51 }
 0x21c   : > { %1752 = vmatpush.bf16.msra.mxu1 %v3332_v61 }
 0x21d   : > { %1738 = vmatpush.bf16.msra.mxu0 %v3328_v1  ;;  %1765 = vmatpush.bf16.msra.mxu2 %v3348_v9  ;;  %vm4621_vm7 = vcmp.eq.s32.totalorder %v1560_v55, %v1561_v49 }
 0x220   : > { %1753 = vmatpush.bf16.msra.mxu1 %v3320_v39 }
 0x221   : > { %1739 = vmatpush.bf16.msra.mxu0 %v3316_v4  ;;  %1766 = vmatpush.bf16.msra.mxu2 %v3336_v17 }
 0x224   : > { %1754 = vmatpush.bf16.msra.mxu1 %v3308_v10 }
 0x225   : > { %1740 = vmatpush.bf16.msra.mxu0 %v3304_v15  ;;  %1767 = vmatpush.bf16.msra.mxu2 %v3324_v20 }
 0x227   : > { %1755 = vmatmul.bf16.vlgmr.msra.gmra.mxu1 %v1564_v16 }
 0x228   : > { %1741 = vmatmul.bf16.vlgmr.msra.gmra.mxu0 %v1564_v16 }
 0x229   : > { %1768 = vmatpush.bf16.msra.mxu2 %v3312_v24 }
 0x22c   : > { %1769 = vmatmul.bf16.vlgmr.msra.gmra.mxu2 %v1564_v16 }
 0x2a4   : > { %v1756_v25 = vpop.f32.mrf.mxu1 }
 0x2a5   : > { %v1742_v31 = vpop.f32.mrf.mxu0  ;;  %v4598_v32 = vadd.f32 %v1756_v25, %v1600_v27 }
 0x2a6   : > { %v4600_v33 = vadd.f32 %v1742_v31, %v1599_v30 }
 0x2ac   : > { %v1758_v28 = vpop.f32.mrf.mxu1 }
 0x2ad   : > { %v4592_v29 = vadd.f32 %v1758_v28, %v1600_v27  ;;  %v1744_v36 = vpop.f32.mrf.mxu0 }
 0x2ae   : > { %v4608_v38 = vadd.f32 %v1744_v36, %v1599_v30 }
 0x2af   : > { %1871 = vrot.lane.b32.xlu2 %v4592_v29, %s4202_s14  ;;  %3397 = vmatpush.xpose.msk.msrb.mxu0 %vm1775_vm4, %v4592_v29  ;;  %v1770_v34 = vpop.f32.mrf.mxu2 }
 0x2b0   : > { %v1771_v41 = vadd.f32 %v1770_v34, %v1601_v37 }
 0x2b3   : > { %3398 = vmatpush.xpose.msk.msrb.mxu0 %vm1775_vm4, %v4598_v32 }
 0x2b6   : > { %3399 = vmatmul.msk.f32.vlgmr.msrb.gmra.mxu0 %vm1775_vm4, %v4600_v33 }
 0x2b7   : > { %1869 = vrot.lane.b32.xlu2 %v4598_v32, %s4202_s14  ;;  %v1772_v40 = vpop.f32.mrf.mxu2 }
 0x2b8   : > { %v1773_v42 = vadd.f32 %v1772_v40, %v1601_v37 }
 0x2ba   : > { %1856 = vmatpush.msra.mxu3 %v1773_v42  ;;  %v4634_v2 = vpack.i.bf16 %v1771_v41, %v1773_v42 }
 0x2bc   : > { %1857 = vmatpush.msra.mxu3 %v1771_v41 }
 0x2be   : > { %3400 = vmatmul.msk.f32.gmra.mxu0 %vm1775_vm4, %v4608_v38 }
 0x309   : > { %v1872_v43 = vpop.permute.xlu2 %1871 }
 0x30a   : > { %3403 = vmatpush.xpose.msk.msrb.mxu3 %vm1775_vm4, %v1872_v43 }
 0x311   : > { %v1870_v44 = vpop.permute.xlu2 %1869 }
 0x312   : > { %3404 = vmatpush.xpose.msk.msrb.mxu3 %vm1775_vm4, %v1870_v44 }
 0x333   : > { %v1805_v52 = vpop.f32.mrf.mxu0 }
 0x334   : > { %v1811_v53 = vsel %vm4614_vm5, %v1805_v52, -1e+30 }
 0x335   : > { %v1814_v54 = vsel %vm1813_vm6, %v1811_v53, -inf }
 0x336   : > { %1815 = vmax.xlane.f32.xlu0 %v1814_v54 }
 0x33b   : > { %v1808_v57 = vpop.f32.mrf.mxu0 }
 0x33c   : > { %v1812_v59 = vsel %vm4621_vm7, %v1808_v57, -1e+30 }
 0x33d   : > { %v1817_v60 = vsel %vm1813_vm6, %v1812_v59, -inf }
 0x33e   : > { %1818 = vmax.xlane.f32.xlu0 %v1817_v60 }
 0x352   : > { %1865 = vrot.lane.b32.xlu0 %v4600_v33, %s4202_s14 }
 0x3a9   : > { %v1816_v61 = vpop.xlane.xlu0 %1815 }
 0x3aa   : > { %v1820_v62 = vsub.f32 %v1811_v53, %v1816_v61 }
 0x3ac   : > { %v1822_v63 = vmul.f32 1.442695, %v1820_v62 }
 0x3ae   : > { %3893 = vpow2.f32 %v1822_v63 }
 0x3b1   : > { %v1819_v0 = vpop.xlane.xlu0 %1818 }
 0x3b2   : > { %v1821_v1 = vsub.f32 %v1812_v59, %v1819_v0 }
 0x3b4   : > { %v3894_v11 = vpop.eup %3893  ;;  %v1824_v23 = vmul.f32 1.442695, %v1821_v1 }
 0x3b5   : > { %v1826_v35 = vsel %vm1813_vm6, %v3894_v11, 0.0 }
 0x3b6   : > { %3895 = vpow2.f32 %v1824_v23  ;;  %1827 = vadd.xlane.f32.xlu1 %v1826_v35 }
 0x3bc   : > { %v3896_v39 = vpop.eup %3895 }
 0x3bd   : > { %v1829_v58 = vsel %vm1813_vm6, %v3896_v39, 0.0 }
 0x3be   : > { %1830 = vadd.xlane.f32.xlu1 %v1829_v58 }
 0x3c4   : > { %v1866_v10 = vpop.permute.xlu0 %1865 }
 0x3d7   : > { %1867 = vrot.lane.b32.xlu1 %v4608_v38, %s4202_s14 }
 0x3df   : > { %3857 = vrot.lane.b32.xlu1 %v4634_v2, %s4202_s14 }
 0x3e7   : > { %1971 = vrot.lane.b32.xlu1 %v4592_v29, %s4203_s16 }
 0x3ef   : > { %2069 = vrot.lane.b32.xlu1 %v4592_v29, %s4204_s1 }
 0x3f7   : > { %2067 = vrot.lane.b32.xlu1 %v4598_v32, %s4204_s1 }
 0x3ff   : > { %1965 = vrot.lane.b32.xlu1 %v4600_v33, %s4203_s16 }
 0x407   : > { %1967 = vrot.lane.b32.xlu1 %v4608_v38, %s4203_s16 }
 0x429   : > { %v1828_v3 = vpop.xlane.xlu1 %1827 }
 0x42a   : > { %3897 = vrcp.f32 %v1828_v3 }
 0x430   : > { %v3898_v5 = vpop.eup %3897 }
 0x431   : > { %v1831_v4 = vpop.xlane.xlu1 %1830  ;;  %v1834_v7 = vmul.f32 %v3898_v5, %v3894_v11 }
 0x432   : > { %3899 = vrcp.f32 %v1831_v4 }
 0x433   : > { %3401 = vmatmul.msk.f32.vlgmr.msra.gmra.mxu3 %vm1813_vm6, %v1834_v7 }
 0x438   : > { %v3900_v8 = vpop.eup %3899 }
 0x439   : > { %v1835_v9 = vmul.f32 %v3900_v8, %v3896_v39 }
 0x43b   : > { %3402 = vmatmul.msk.f32.gmra.mxu3 %vm1813_vm6, %v1835_v9 }
 0x443   : > { %3405 = vmatmul.msk.f32.vlgmr.msrb.gmra.mxu3 %vm1775_vm4, %v1866_v10 }
 0x449   : > { %v1868_v13 = vpop.permute.xlu1 %1867 }
 0x44b   : > { %3406 = vmatmul.msk.f32.gmra.mxu3 %vm1775_vm4, %v1868_v13 }
 0x451   : > { %v3858_v14 = vpop.permute.xlu1 %3857 }
 0x452   : > { %v3860_v15 = vunpack.i.h.bf16 %v3858_v14  ;;  %v3859_v16 = vunpack.i.l.bf16 %v3858_v14 }
 0x454   : > { %3752 = vmatpush.msra.mxu3 %v3859_v16  ;;  %1956 = vmatpush.msra.mxu0 %v3859_v16 }
 0x456   : > { %3753 = vmatpush.msra.mxu3 %v3860_v15  ;;  %1957 = vmatpush.msra.mxu0 %v3860_v15 }
 0x459   : > { %v1972_v17 = vpop.permute.xlu1 %1971 }
 0x45a   : > { %3409 = vmatpush.xpose.msk.msrb.mxu1 %vm1775_vm4, %v1972_v17 }
 0x461   : > { %v2070_v18 = vpop.permute.xlu1 %2069 }
 0x462   : > { %3415 = vmatpush.xpose.msk.msrb.mxu3 %vm1775_vm4, %v2070_v18 }
 0x469   : > { %v2068_v19 = vpop.permute.xlu1 %2067 }
 0x46a   : > { %3416 = vmatpush.xpose.msk.msrb.mxu3 %vm1775_vm4, %v2068_v19 }
 0x471   : > { %v1966_v36 = vpop.permute.xlu1 %1965 }
 0x479   : > { %v1968_v41 = vpop.permute.xlu1 %1967 }
 0x4b6   : > { %v4655_v20 = vpop.f32.mrf.mxu3 }
 0x4be   : > { %v4657_v21 = vpop.f32.mrf.mxu3 }
 0x4c6   : > { %v1898_v22 = vpop.f32.mrf.mxu3 }
 0x4c7   : > { %v1904_v24 = vsel %vm4614_vm5, %v1898_v22, -1e+30 }
 0x4c8   : > { %v1906_v25 = vsel %vm1813_vm6, %v1904_v24, -inf }
 0x4c9   : > { %1907 = vmax.xlane.f32.xlu1 %v1906_v25 }
 0x4ce   : > { %v1901_v26 = vpop.f32.mrf.mxu3 }
 0x4cf   : > { %v1905_v27 = vsel %vm4621_vm7, %v1901_v26, -1e+30 }
 0x4d0   : > { %v1909_v28 = vsel %vm1813_vm6, %v1905_v27, -inf }
 0x4d1   : > { %1910 = vmax.xlane.f32.xlu2 %v1909_v28 }
 0x4e9   : > { %1969 = vrot.lane.b32.xlu2 %v4598_v32, %s4203_s16 }
 0x4f1   : > { %2065 = vrot.lane.b32.xlu2 %v4608_v38, %s4204_s1 }
 0x53c   : > { %v1908_v42 = vpop.xlane.xlu1 %1907 }
 0x53d   : > { %v1912_v45 = vsub.f32 %v1904_v24, %v1908_v42 }
 0x53f   : > { %v1914_v48 = vmul.f32 1.442695, %v1912_v45 }
 0x544   : > { %v1911_v29 = vpop.xlane.xlu2 %1910 }
 0x545   : > { %v1913_v30 = vsub.f32 %v1905_v27, %v1911_v29 }
 0x547   : > { %v1916_v31 = vmul.f32 1.442695, %v1913_v30 }
 0x549   : > { %3901 = vpow2.f32 %v1916_v31 }
 0x54c   : > { %v1970_v34 = vpop.permute.xlu2 %1969 }
 0x54d   : > { %3410 = vmatpush.xpose.msk.msrb.mxu1 %vm1775_vm4, %v1970_v34 }
 0x54f   : > { %v3902_v37 = vpop.eup %3901 }
 0x550   : > { %3411 = vmatmul.msk.f32.vlgmr.msrb.gmra.mxu1 %vm1775_vm4, %v1966_v36  ;;  %v1921_v40 = vsel %vm1813_vm6, %v3902_v37, 0.0 }
 0x551   : > { %1922 = vadd.xlane.f32.xlu0 %v1921_v40 }
 0x554   : > { %v2066_v54 = vpop.permute.xlu2 %2065 }
 0x558   : > { %3412 = vmatmul.msk.f32.gmra.mxu1 %vm1775_vm4, %v1968_v41 }
 0x565   : > { %2063 = vrot.lane.b32.xlu0 %v4600_v33, %s4204_s1 }
 0x5c4   : > { %v1923_v32 = vpop.xlane.xlu0 %1922 }
 0x5c5   : > { %3903 = vrcp.f32 %v1923_v32 }
 0x5c6   : > { %3905 = vpow2.f32 %v1914_v48 }
 0x5cb   : > { %v3904_v38 = vpop.eup %3903 }
 0x5cc   : > { %v1927_v43 = vmul.f32 %v3904_v38, %v3902_v37  ;;  %v3906_v53 = vpop.eup %3905 }
 0x5cd   : > { %v1998_v44 = vpop.f32.mrf.mxu1  ;;  %v1918_v55 = vsel %vm1813_vm6, %v3906_v53, 0.0 }
 0x5ce   : > { %v2004_v46 = vsel %vm4614_vm5, %v1998_v44, -1e+30  ;;  %3408 = vmatmul.msk.f32.vlgmr.msra.gmra.mxu3 %vm1813_vm6, %v1927_v43 }
 0x5cf   : > { %v2006_v47 = vsel %vm1813_vm6, %v2004_v46, -inf }
 0x5d0   : > { %2007 = vmax.xlane.f32.xlu2 %v2006_v47 }
 0x5d5   : > { %v2001_v49 = vpop.f32.mrf.mxu1 }
 0x5d6   : > { %v2005_v33 = vsel %vm4621_vm7, %v2001_v49, -1e+30  ;;  %v3727_v49 = vld [vmem:[%s4459_s30 + $0x38] sm:$0xff] }
 0x5d7   : > { %v2064_v51 = vpop.permute.xlu0 %2063  ;;  %v2009_v52 = vsel %vm1813_vm6, %v2005_v33, -inf  ;;  %2262 = vmatpush.bf16.msra.mxu1 %v3727_v49 }
 0x5d8   : > { %3417 = vmatmul.msk.f32.vlgmr.msrb.gmra.mxu3 %vm1775_vm4, %v2064_v51  ;;  %2010 = vmax.xlane.f32.xlu2 %v2009_v52  ;;  %v3725_v51 = vld [vmem:[%s4459_s30 + $0x28] sm:$0xff]  ;;  %v3724_v52 = vld [vmem:[%s4459_s30 + $0x20] sm:$0xff] }
 0x5e0   : > { %1919 = vadd.xlane.f32.xlu2 %v1918_v55  ;;  %3418 = vmatmul.msk.f32.gmra.mxu3 %vm1775_vm4, %v2066_v54  ;;  %v3723_v54 = vld [vmem:[%s4459_s30 + $0x18] sm:$0xff]  ;;  %v3722_v55 = vld [vmem:[%s4459_s30 + $0x10] sm:$0xff] }
 0x643   : > { %v2008_v57 = vpop.xlane.xlu2 %2007 }
 0x644   : > { %v2012_v1 = vsub.f32 %v2004_v46, %v2008_v57 }
 0x646   : > { %v2014_v35 = vmul.f32 1.442695, %v2012_v1 }
 0x64b   : > { %v2011_v59 = vpop.xlane.xlu2 %2010 }
 0x64c   : > { %v2013_v58 = vsub.f32 %v2005_v33, %v2011_v59  ;;  %v3726_v33 = vld [vmem:[%s4459_s30 + $0x30] sm:$0xff]  ;;  %v3721_v59 = vld [vmem:[%s4459_s30 + $0x8] sm:$0xff] }
 0x64d   : > { %2263 = vmatpush.bf16.msra.mxu1 %v3726_v33 }
 0x64e   : > { %v2016_v4 = vmul.f32 1.442695, %v2013_v58 }
 0x651   : > { %v1962_v60 = vpop.f32.mrf.mxu3  ;;  %2264 = vmatpush.bf16.msra.mxu1 %v3725_v51 }
 0x653   : > { %v1920_v61 = vpop.xlane.xlu2 %1919 }
 0x654   : > { %3907 = vrcp.f32 %v1920_v61  ;;  %v3720_v61 = vld [vmem:[%s4459_s30] sm:$0xff] }
 0x655   : > { %3909 = vpow2.f32 %v2014_v35  ;;  %2265 = vmatpush.bf16.msra.mxu1 %v3724_v52  ;;  %v3741_v52 = vld [vmem:[%s4463_s11 + $0x68] sm:$0xff] }
 0x656   : > { %3911 = vpow2.f32 %v2016_v4 }
 0x659   : > { %2266 = vmatpush.bf16.msra.mxu1 %v3723_v54 }
 0x65a   : > { %v3908_v62 = vpop.eup %3907 }
 0x65b   : > { %v1926_v63 = vmul.f32 %v3908_v62, %v3906_v53  ;;  %v2096_v0 = vpop.f32.mrf.mxu3  ;;  %v3910_v7 = vpop.eup %3909 }
 0x65c   : > { %v2102_v11 = vsel %vm4614_vm5, %v2096_v0, -1e+30  ;;  %v2018_v50 = vsel %vm1813_vm6, %v3910_v7, 0.0  ;;  %v3912_v8 = vpop.eup %3911 }
 0x65d   : > { %3407 = vmatmul.msk.f32.vlgmr.msra.gmra.mxu0 %vm1813_vm6, %v1926_v63  ;;  %v2104_v23 = vsel %vm1813_vm6, %v2102_v11, -inf  ;;  %v2021_v9 = vsel %vm1813_vm6, %v3912_v8, 0.0  ;;  %2267 = vmatpush.bf16.msra.mxu1 %v3722_v55  ;;  %v3740_v55 = vld [vmem:[%s4463_s11 + $0x60] sm:$0xff] }
 0x65e   : > { %2105 = vmax.xlane.f32.xlu0 %v2104_v23 }
 0x661   : > { %2268 = vmatpush.bf16.msra.mxu1 %v3721_v59 }
 0x663   : > { %v2099_v39 = vpop.f32.mrf.mxu3 }
 0x664   : > { %v2103_v3 = vsel %vm4621_vm7, %v2099_v39, -1e+30 }
 0x665   : > { %v2107_v5 = vsel %vm1813_vm6, %v2103_v3, -inf  ;;  %2269 = vmatpush.bf16.msra.mxu1 %v3720_v61 }
 0x666   : > { %2108 = vmax.xlane.f32.xlu1 %v2107_v5 }
 0x66e   : > { %2019 = vadd.xlane.f32.xlu1 %v2018_v50 }
 0x672   : > { %3862 = vrot.lane.b32.xlu0 %v4634_v2, %s4203_s16 }
 0x676   : > { %2022 = vadd.xlane.f32.xlu1 %v2021_v9 }
 0x6d1   : > { %v2106_v10 = vpop.xlane.xlu0 %2105 }
 0x6d2   : > { %v2110_v13 = vsub.f32 %v2102_v11, %v2106_v10  ;;  %v3886_v10 = vld [vmem:[%s4461_s12] ss:$0 sm:$0xff] }
 0x6d4   : > { %v2112_v56 = vmul.f32 1.442695, %v2110_v13 }
 0x6d6   : > { %3913 = vpow2.f32 %v2112_v56 }
 0x6d9   : > { %v2109_v14 = vpop.xlane.xlu1 %2108 }
 0x6da   : > { %v2111_v15 = vsub.f32 %v2103_v3, %v2109_v14  ;;  %v1959_v16 = vpop.f32.mrf.mxu0 }
 0x6db   : > { %v3871_v17 = vpack.i.bf16 %v1962_v60, %v1959_v16 }
 0x6dc   : > { %v3914_v18 = vpop.eup %3913  ;;  %v2114_v19 = vmul.f32 1.442695, %v2111_v15 }
 0x6dd   : > { %3872 = vrot.lane.b32.xlu0 %v3871_v17, %s4204_s1  ;;  %v2116_v22 = vsel %vm1813_vm6, %v3914_v18, 0.0 }
 0x6de   : > { %3915 = vpow2.f32 %v2114_v19  ;;  %2117 = vadd.xlane.f32.xlu2 %v2116_v22 }
 0x6e1   : > { %v2020_v24 = vpop.xlane.xlu1 %2019 }
 0x6e2   : > { %3917 = vrcp.f32 %v2020_v24 }
 0x6e4   : > { %v3916_v25 = vpop.eup %3915  ;;  %v3863_v26 = vpop.permute.xlu0 %3862 }
 0x6e5   : > { %v2119_v27 = vsel %vm1813_vm6, %v3916_v25, 0.0  ;;  %v3864_v28 = vunpack.i.l.bf16 %v3863_v26  ;;  %v3865_v29 = vunpack.i.h.bf16 %v3863_v26 }
 0x6e6   : > { %2120 = vadd.xlane.f32.xlu1 %v2119_v27 }
 0x6e7   : > { %2054 = vmatpush.msrb.mxu2 %v3864_v28 }
 0x6e8   : > { %v3918_v30 = vpop.eup %3917 }
 0x6e9   : > { %2055 = vmatpush.msrb.mxu2 %v3865_v29  ;;  %v2023_v31 = vpop.xlane.xlu1 %2022  ;;  %v2026_v34 = vmul.f32 %v3918_v30, %v3910_v7 }
 0x6ea   : > { %3919 = vrcp.f32 %v2023_v31 }
 0x6eb   : > { %3413 = vmatmul.msk.f32.vlgmr.msrb.gmra.mxu2 %vm1813_vm6, %v2026_v34  ;;  %v3735_v34 = vld [vmem:[%s4463_s11 + $0x38] sm:$0xff] }
 0x6ec   : > { %2409 = vmatpush.bf16.msra.mxu2 %v3735_v34 }
 0x6f0   : > { %v3920_v36 = vpop.eup %3919 }
 0x6f1   : > { %v2027_v37 = vmul.f32 %v3920_v36, %v3912_v8  ;;  %v3734_v36 = vld [vmem:[%s4463_s11 + $0x30] sm:$0xff] }
 0x6f2   : > { %2410 = vmatpush.bf16.msra.mxu2 %v3734_v36 }
 0x6f3   : > { %3414 = vmatmul.msk.f32.gmra.mxu2 %vm1813_vm6, %v2027_v37  ;;  %v3733_v37 = vld [vmem:[%s4463_s11 + $0x28] sm:$0xff] }
 0x6f6   : > { %3867 = vrot.lane.b32.xlu2 %v4634_v2, %s4204_s1  ;;  %2411 = vmatpush.bf16.msra.mxu2 %v3733_v37 }
 0x74f   : > { %v3873_v62 = vpop.permute.xlu0 %3872 }
 0x750   : > { %v3875_v0 = vunpack.i.h.bf16 %v3873_v62  ;;  %v3874_v1 = vunpack.i.l.bf16 %v3873_v62 }
 0x751   : > { %v2118_v40 = vpop.xlane.xlu2 %2117 }
 0x752   : > { %3921 = vrcp.f32 %v2118_v40  ;;  %v2186_v39 = vsel %vm1775_vm4, %v4657_v21, %v3875_v0  ;;  %v2185_v58 = vsel %vm1775_vm4, %v4655_v20, %v3874_v1  ;;  %v4205_v20 = vmov 128.0   ;;  %v3732_v40 = vld [vmem:[%s4463_s11 + $0x20] sm:$0xff] }
 0x753   : > { %2412 = vmatpush.bf16.msra.mxu2 %v3732_v40 }
 0x758   : > { %v3922_v38 = vpop.eup %3921 }
 0x759   : > { %v2121_v41 = vpop.xlane.xlu1 %2120  ;;  %v3868_v32 = vpop.permute.xlu2 %3867  ;;  %v2124_v44 = vmul.f32 %v3922_v38, %v3914_v18  ;;  %v3729_v38 = vld [vmem:[%s4463_s11 + $0x8] sm:$0xff] }
 0x75a   : > { %v3869_v42 = vunpack.i.l.bf16 %v3868_v32  ;;  %3923 = vrcp.f32 %v2121_v41  ;;  %v3870_v43 = vunpack.i.h.bf16 %v3868_v32  ;;  %v3731_v41 = vld [vmem:[%s4463_s11 + $0x18] sm:$0xff]  ;;  %v3730_v32 = vld [vmem:[%s4463_s11 + $0x10] sm:$0xff] }
 0x75b   : > { %3925 = vrcp.f32 %v4205_v20  ;;  %2413 = vmatpush.bf16.msra.mxu2 %v3731_v41 }
 0x75c   : > { %2152 = vmatpush.msrb.mxu0 %v3869_v42 }
 0x75e   : > { %2153 = vmatpush.msrb.mxu0 %v3870_v43  ;;  %v3728_v43 = vld [vmem:[%s4463_s11] sm:$0xff] }
 0x75f   : > { %3419 = vmatmul.msk.f32.vlgmr.msrb.gmra.mxu0 %vm1813_vm6, %v2124_v44  ;;  %2414 = vmatpush.bf16.msra.mxu2 %v3730_v32 }
 0x760   : > { %v3924_v45 = vpop.eup %3923 }
 0x761   : > { %v2125_v2 = vmul.f32 %v3924_v45, %v3916_v25  ;;  %v3926_v17 = vpop.eup %3925 }
 0x762   : > { %v2287_v18 = vmul.f32 128.0, %v3926_v17  ;;  %vm2291_vm10 = vweird.f32 %v3926_v17 }
 0x763   : > { %2415 = vmatpush.bf16.msra.mxu2 %v3729_v38 }
 0x764   : > { %v2288_v19 = vsub.f32 1.0, %v2287_v18 }
 0x766   : > { %v2289_v22 = vmul.f32 %v3926_v17, %v2288_v19 }
 0x767   : > { %3420 = vmatmul.msk.f32.gmra.mxu0 %vm1813_vm6, %v2125_v2  ;;  %2416 = vmatpush.bf16.msra.mxu2 %v3728_v43  ;;  %v3743_v2 = vld [vmem:[%s4463_s11 + $0x78] sm:$0xff] }
 0x768   : > { %v2290_v24 = vadd.f32 %v3926_v17, %v2289_v22  ;;  %2496 = vmatpush.bf16.msra.mxu3 %v3743_v2  ;;  %v3890_v22 = vld [vmem:[%s4461_s12 + $0x4] ss:$0 sm:$0xff] }
 0x76a   : > { %v4722_v25 = vsel %vm2291_vm10, %v3926_v17, %v2290_v24 }
 0x76e   : > { %v2057_v46 = vpop.f32.mrf.mxu2 }
 0x776   : > { %v2060_v47 = vpop.f32.mrf.mxu2 }
 0x777   : > { %v3876_v48 = vpack.i.bf16 %v2060_v47, %v2057_v46 }
 0x779   : > { %3877 = vrot.lane.b32.xlu1 %v3876_v48, %s4203_s16  ;;  %v3742_v48 = vld [vmem:[%s4463_s11 + $0x70] sm:$0xff] }
 0x77a   : > { %2497 = vmatpush.bf16.msra.mxu3 %v3742_v48 }
 0x77e   : > { %2498 = vmatpush.bf16.msra.mxu3 %v3741_v52 }
 0x782   : > { %2499 = vmatpush.bf16.msra.mxu3 %v3740_v55 }
 0x7dc   : > { %v2155_v53 = vpop.f32.mrf.mxu0 }
 0x7e4   : > { %v2158_v57 = vpop.f32.mrf.mxu0 }
 0x7e5   : > { %v3881_v60 = vpack.i.bf16 %v2158_v57, %v2155_v53 }
 0x7e7   : > { %3882 = vrot.lane.b32.xlu0 %v3881_v60, %s4202_s14 }
 0x7eb   : > { %v3878_v63 = vpop.permute.xlu1 %3877 }
 0x7ec   : > { %v3880_v11 = vunpack.i.h.bf16 %v3878_v63  ;;  %v3879_v23 = vunpack.i.l.bf16 %v3878_v63 }
 0x7ee   : > { %v2188_v4 = vsel %vm2187_vm8, %v2185_v58, %v3879_v23  ;;  %v2189_v7 = vsel %vm2187_vm8, %v2186_v39, %v3880_v11  ;;  %v3887_v23 = vld [vmem:[%s4461_s12 + $0x1] ss:$0 sm:$0xff] }
 0x859   : > { %v3883_v35 = vpop.permute.xlu0 %3882 }
 0x85a   : > { %v3885_v3 = vunpack.i.h.bf16 %v3883_v35  ;;  %v3884_v5 = vunpack.i.l.bf16 %v3883_v35 }
 0x85c   : > { %v2192_v50 = vsel %vm2190_vm9, %v2189_v7, %v3885_v3  ;;  %v2191_v8 = vsel %vm2190_vm9, %v2188_v4, %v3884_v5  ;;  %v3888_v5 = vld [vmem:[%s4461_s12 + $0x2] ss:$0 sm:$0xff] }
 0x85d   : > { %v2193_v9 = vpack.c.bf16 %v2192_v50, %v2191_v8 }
 0x85f   : > { %2270 = vmatmul.bf16.vlgmr.msra.gmra.mxu1 %v2193_v9  ;;  %v3739_v9 = vld [vmem:[%s4463_s11 + $0x58] sm:$0xff] }
 0x860   : > { %2500 = vmatpush.bf16.msra.mxu3 %v3739_v9 }
 0x8dc   : > { %v2271_v13 = vpop.f32.mrf.mxu1 }
 0x8dd   : > { %v2272_v56 = vadd.f32 %v3886_v10, %v2271_v13  ;;  %v3737_v13 = vld [vmem:[%s4463_s11 + $0x48] sm:$0xff] }
 0x8df   : > { %v2276_v14 = vadd.f32 %v2272_v56, %v4577_v6  ;;  %v3736_v56 = vld [vmem:[%s4463_s11 + $0x40] sm:$0xff] }
 0x8e1   : > { %2282 = vadd.xlane.f32.xlu0 %v2276_v14 }
 0x8e4   : > { %v2273_v15 = vpop.f32.mrf.mxu1 }
 0x8e5   : > { %v2274_v16 = vadd.f32 %v3886_v10, %v2273_v15  ;;  %v3738_v10 = vld [vmem:[%s4463_s11 + $0x50] sm:$0xff]  ;;  %s4841_s11 = sld [smem:[#allocation25_spill]] (!%p3539_p8) }
 0x8e6   : > { %2501 = vmatpush.bf16.msra.mxu3 %v3738_v10  ;;  %v3889_v15 = vld [vmem:[%s4461_s12 + $0x3] ss:$0 sm:$0xff] }
 0x8e7   : > { %v2277_v21 = vadd.f32 %v2274_v16, %v4581_v12 }
 0x8e9   : > { %2284 = vadd.xlane.f32.xlu2 %v2277_v21 }
 0x8ea   : > { %2502 = vmatpush.bf16.msra.mxu3 %v3737_v13 }
 0x8ee   : > { %2503 = vmatpush.bf16.msra.mxu3 %v3736_v56 }
 0x954   : > { %v2283_v6 = vpop.xlane.xlu0 %2282 }
 0x955   : > { %v2293_v26 = vmul.f32 %v4722_v25, %v2283_v6 }
 0x957   : > { %v2295_v27 = vsub.f32 %v2276_v14, %v2293_v26 }
 0x959   : > { %v2297_v12 = vmul.f32 %v2295_v27, %v2295_v27 }
 0x95b   : > { %2299 = vadd.xlane.f32.xlu1 %v2297_v12 }
 0x95c   : > { %v2285_v28 = vpop.xlane.xlu2 %2284 }
 0x95d   : > { %v2294_v29 = vmul.f32 %v4722_v25, %v2285_v28 }
 0x95f   : > { %v2296_v30 = vsub.f32 %v2277_v21, %v2294_v29 }
 0x961   : > { %v2298_v31 = vmul.f32 %v2296_v30, %v2296_v30 }
 0x963   : > { %2301 = vadd.xlane.f32.xlu0 %v2298_v31 }
 0x9ce   : > { %v2300_v42 = vpop.xlane.xlu1 %2299 }
 0x9cf   : > { %v2303_v44 = vmul.f32 %v2300_v42, %v4722_v25 }
 0x9d1   : > { %v2305_v45 = vadd.f32 1e-05, %v2303_v44 }
 0x9d3   : > { %3927 = vrsqrt.f32 %v2305_v45  ;;  %vm2313_vm12 = vweird.f32 %v2305_v45 }
 0x9d6   : > { %v2302_v46 = vpop.xlane.xlu0 %2301 }
 0x9d7   : > { %v2304_v47 = vmul.f32 %v2302_v46, %v4722_v25 }
 0x9d9   : > { %v3928_v49 = vpop.eup %3927  ;;  %v2306_v33 = vadd.f32 1e-05, %v2304_v47 }
 0x9da   : > { %v2308_v51 = vmul.f32 %v3928_v49, %v2305_v45  ;;  %vm2314_vm11 = vweird.f32 %v3928_v49 }
 0x9db   : > { %3929 = vrsqrt.f32 %v2306_v33  ;;  %vm2315_vm13 = vmor %vm2313_vm12, %vm2314_vm11  ;;  %vm2323_vm15 = vweird.f32 %v2306_v33 }
 0x9dc   : > { %v2309_v53 = vmul.f32 %v3928_v49, %v2308_v51 }
 0x9de   : > { %v2310_v54 = vmul.f32 0.5, %v2309_v53  ;;  %v3891_v53 = vld [vmem:[%s4461_s12 + $0x5] ss:$0 sm:$0xff] }
 0x9e0   : > { %v2311_v57 = vsub.f32 1.5, %v2310_v54 }
 0x9e1   : > { %v3930_v59 = vpop.eup %3929 }
 0x9e2   : > { %v2312_v60 = vmul.f32 %v3928_v49, %v2311_v57  ;;  %v2318_v61 = vmul.f32 %v3930_v59, %v2306_v33  ;;  %vm2324_vm14 = vweird.f32 %v3930_v59  ;;  %v3892_v57 = vld [vmem:[%s4461_s12 + $0x6] ss:$0 sm:$0xff] }
 0x9e3   : > { %vm2325_vm0 = vmor %vm2323_vm15, %vm2324_vm14 }
 0x9e4   : > { %v2319_v62 = vmul.f32 %v3930_v59, %v2318_v61  ;;  %v2316_v63 = vsel %vm2315_vm13, %v3928_v49, %v2312_v60 }
 0x9e5   : > { %v2327_v11 = vmul.f32 %v2316_v63, %v2295_v27 }
 0x9e6   : > { %v2320_v0 = vmul.f32 0.5, %v2319_v62 }
 0x9e7   : > { %v2332_v3 = vmul.f32 %v3887_v23, %v2327_v11 }
 0x9e8   : > { %v2321_v1 = vsub.f32 1.5, %v2320_v0 }
 0x9e9   : > { %v2337_v7 = vadd.f32 %v3888_v5, %v2332_v3 }
 0x9ea   : > { %v2322_v35 = vmul.f32 %v3930_v59, %v2321_v1 }
 0x9ec   : > { %v2326_v39 = vsel %vm2325_vm0, %v3930_v59, %v2322_v35 }
 0x9ed   : > { %v2328_v58 = vmul.f32 %v2326_v39, %v2296_v30 }
 0x9ef   : > { %v2333_v4 = vmul.f32 %v3887_v23, %v2328_v58 }
 0x9f1   : > { %v2338_v50 = vadd.f32 %v3888_v5, %v2333_v4 }
 0x9f3   : > { %v2339_v8 = vpack.c.bf16 %v2338_v50, %v2337_v7 }
 0x9f5   : > { %2417 = vmatmul.bf16.vlgmr.msra.gmra.mxu2 %v2339_v8 }
 0xa78   : > { %v2418_v14 = vpop.f32.mrf.mxu2 }
 0xa79   : > { %v2419_v16 = vadd.f32 %v3889_v15, %v2418_v14 }
 0xa7b   : > { %v2423_v17 = vmax.f32 %v2419_v16, 0.0 }
 0xa80   : > { %v2420_v21 = vpop.f32.mrf.mxu2 }
 0xa81   : > { %v2421_v20 = vadd.f32 %v3889_v15, %v2420_v21 }
 0xa83   : > { %v2424_v18 = vmax.f32 %v2421_v20, 0.0 }
 0xa85   : > { %v2425_v19 = vpack.c.bf16 %v2424_v18, %v2423_v17 }
 0xa87   : > { %2504 = vmatmul.bf16.vlgmr.msra.gmra.mxu3 %v2425_v19 }
 0xb0a   : > { %v2505_v24 = vpop.f32.mrf.mxu3 }
 0xb0b   : > { %v2506_v6 = vadd.f32 %v3890_v22, %v2505_v24 }
 0xb0d   : > { %v2510_v26 = vadd.f32 %v2506_v6, %v2337_v7 }
 0xb0f   : > { %2516 = vadd.xlane.f32.xlu2 %v2510_v26 }
 0xb12   : > { %v2507_v27 = vpop.f32.mrf.mxu3 }
 0xb13   : > { %v2508_v12 = vadd.f32 %v3890_v22, %v2507_v27 }
 0xb15   : > { %v2511_v28 = vadd.f32 %v2508_v12, %v2338_v50 }
 0xb17   : > { %2518 = vadd.xlane.f32.xlu0 %v2511_v28 }
 0xb82   : > { %v2517_v29 = vpop.xlane.xlu2 %2516 }
 0xb83   : > { %v2520_v30 = vmul.f32 %v2517_v29, %v4722_v25 }
 0xb85   : > { %v2522_v31 = vsub.f32 %v2510_v26, %v2520_v30 }
 0xb87   : > { %v2524_v34 = vmul.f32 %v2522_v31, %v2522_v31 }
 0xb89   : > { %2526 = vadd.xlane.f32.xlu2 %v2524_v34 }
 0xb8a   : > { %v2519_v36 = vpop.xlane.xlu0 %2518 }
 0xb8b   : > { %v2521_v37 = vmul.f32 %v2519_v36, %v4722_v25 }
 0xb8d   : > { %v2523_v40 = vsub.f32 %v2511_v28, %v2521_v37 }
 0xb8f   : > { %v2525_v41 = vmul.f32 %v2523_v40, %v2523_v40 }
 0xb91   : > { %2528 = vadd.xlane.f32.xlu1 %v2525_v41 }
 0xbfc   : > { %v2527_v32 = vpop.xlane.xlu2 %2526 }
 0xbfd   : > { %v2530_v38 = vmul.f32 %v2527_v32, %v4722_v25 }
 0xbff   : > { %v2532_v42 = vadd.f32 1e-05, %v2530_v38 }
 0xc01   : > { %3931 = vrsqrt.f32 %v2532_v42  ;;  %vm2540_vm2 = vweird.f32 %v2532_v42 }
 0xc04   : > { %v2529_v43 = vpop.xlane.xlu1 %2528 }
 0xc05   : > { %v2531_v44 = vmul.f32 %v2529_v43, %v4722_v25 }
 0xc07   : > { %v3932_v45 = vpop.eup %3931  ;;  %v2533_v2 = vadd.f32 1e-05, %v2531_v44 }
 0xc08   : > { %v2535_v46 = vmul.f32 %v3932_v45, %v2532_v42  ;;  %vm2541_vm1 = vweird.f32 %v3932_v45 }
 0xc09   : > { %3933 = vrsqrt.f32 %v2533_v2  ;;  %vm2542_vm3 = vmor %vm2540_vm2, %vm2541_vm1  ;;  %vm2550_vm5 = vweird.f32 %v2533_v2 }
 0xc0a   : > { %v2536_v47 = vmul.f32 %v3932_v45, %v2535_v46 }
 0xc0c   : > { %v2537_v48 = vmul.f32 0.5, %v2536_v47 }
 0xc0e   : > { %v2538_v49 = vsub.f32 1.5, %v2537_v48 }
 0xc0f   : > { %v3934_v33 = vpop.eup %3933 }
 0xc10   : > { %v2539_v51 = vmul.f32 %v3932_v45, %v2538_v49  ;;  %v2545_v52 = vmul.f32 %v3934_v33, %v2533_v2  ;;  %vm2551_vm4 = vweird.f32 %v3934_v33 }
 0xc11   : > { %vm2552_vm6 = vmor %vm2550_vm5, %vm2551_vm4 }
 0xc12   : > { %v2543_v54 = vsel %vm2542_vm3, %v3932_v45, %v2539_v51  ;;  %v2546_v55 = vmul.f32 %v3934_v33, %v2545_v52 }
 0xc13   : > { %v2554_v59 = vmul.f32 %v2543_v54, %v2522_v31 }
 0xc14   : > { %v2547_v25 = vmul.f32 0.5, %v2546_v55 }
 0xc15   : > { %v2559_v60 = vmul.f32 %v3891_v53, %v2554_v59 }
 0xc16   : > { %v2548_v61 = vsub.f32 1.5, %v2547_v25 }
 0xc17   : > { %v2564_v62 = vadd.f32 %v3892_v57, %v2559_v60 }
 0xc18   : > { %v2549_v63 = vmul.f32 %v3934_v33, %v2548_v61 }
 0xc19   : > { %2566 = vst [vmem:[#allocation2] sm:$0xff] %v2564_v62 }
 0xc1a   : > { %v2553_v0 = vsel %vm2552_vm6, %v3934_v33, %v2549_v63 }
 0xc1b   : > { %v2555_v1 = vmul.f32 %v2553_v0, %v2523_v40 }
 0xc1d   : > { %v2560_v11 = vmul.f32 %v3891_v53, %v2555_v1  ;;  %2571 = sbr.rel (%p3539_p8) target bundleno = 3272 (0xcc8), region = 100 }
 0xc1f   : > { %v2565_v23 = vadd.f32 %v3892_v57, %v2560_v11 }
 0xc21   : > { %2567 = vst [vmem:[#allocation2 + $0x8] sm:$0xff] %v2565_v23 }
 0xc22   : > { %v3751_v35 = vld [vmem:[%s4841_s11 + $0x38] sm:$0xff]  ;;  %v3750_v39 = vld [vmem:[%s4841_s11 + $0x30] sm:$0xff]  ;;  %v3749_v58 = vld [vmem:[%s4841_s11 + $0x28] sm:$0xff]  ;;  %v2573_v50 = vrot.slane %v2565_v23, 7  ;;  %vm2575_vm7 = vcmask 1040384   ;;  %vm2659_vm8 = vcmask 50176  }
 0xc23   : > { %2646 = vmatpush.bf16.msra.mxu0 %v3751_v35  ;;  %v3748_v3 = vld [vmem:[%s4841_s11 + $0x20] sm:$0xff]  ;;  %v3747_v5 = vld [vmem:[%s4841_s11 + $0x18] sm:$0xff]  ;;  %v3746_v4 = vld [vmem:[%s4841_s11 + $0x10] sm:$0xff] }
 0xc24   : > { %v3745_v7 = vld [vmem:[%s4841_s11 + $0x8] sm:$0xff]  ;;  %v3744_v8 = vld [vmem:[%s4841_s11] sm:$0xff]  ;;  %v2576_v9 = vsel %vm2575_vm7, %v2564_v62, %v2573_v50 }
 0xc25   : > { %v2577_v10 = vpack.c.bf16 %v2576_v9, %v2576_v9  ;;  %v3935_v13 = vld [vmem:[%s4842_s17] ss:$0 sm:$0xff] }
 0xc27   : > { %2647 = vmatpush.bf16.msra.mxu0 %v3750_v39 }
 0xc2b   : > { %2648 = vmatpush.bf16.msra.mxu0 %v3749_v58 }
 0xc2f   : > { %2649 = vmatpush.bf16.msra.mxu0 %v3748_v3 }
 0xc33   : > { %2650 = vmatpush.bf16.msra.mxu0 %v3747_v5 }
 0xc37   : > { %2651 = vmatpush.bf16.msra.mxu0 %v3746_v4 }
 0xc3b   : > { %2652 = vmatpush.bf16.msra.mxu0 %v3745_v7 }
 0xc3f   : > { %2653 = vmatpush.bf16.msra.mxu0 %v3744_v8 }
 0xc42   : > { %2654 = vmatmul.bf16.vlgmr.msra.gmra.mxu0 %v2577_v10 }
 0xcbf   : > { %v2655_v56 = vpop.f32.mrf.mxu0 }
 0xcc0   : > { %v2656_v14 = vadd.f32 %v3935_v13, %v2655_v56 }
 0xcc2   : > { %2660 = vst.msk [vmem:[#allocation12] sm:$0x3] %vm2659_vm8, %v2656_v14 }
 0xcc7   : > { %v2657_v15 = vpop.f32.mrf.mxu0 }
 0xcc8 PF: > { %p3806_p9 = scmp.eq.s32.totalorder %s4291_s25, 3  ;;  %s4206_s28 = smov [#allocation12]  }
 0xcc9   : > { %s2667_s14 = sshll.u32 %s4206_s28, 4  ;;  %s4843_s30 = sld [smem:[#allocation27_spill]]  ;;  %s2668_s14 = int_to_ptr.vmem [resolvable:$true] %s2667_s14 }
 0xccf   : > { %s2669_s12 = sshll.u32 %s4843_s30, 4  ;;  %s2670_s12 = int_to_ptr.hbm [resolvable:$true] %s2669_s12 }
 0xcd0   : > { %3778 = dma.vmem_to_hbm [thread:$0]  (%p3806_p9), %s2668_s14, 32, %s2670_s12, [#allocation5]  }
 0xcd1   : > { %4173 = dma.done.wait (%p3806_p9), [#allocation5], 32  }
 0xcd2   : > { %4175 = vsyncadd (%p3806_p9), [#allocation5], 4294967264 }
 0xcd3 PF: > { %s4844_s24 = sld [smem:[#allocation18_spill]]  ;;  %s4847_s21 = smov %s4182_s22 }
 0xcd4   : > { %s4845_s4 = sld [smem:[#allocation17_spill]] }
 0xcd5   : > { %s4846_s23 = sld [smem:[#allocation19_spill]] }
 0xcd9   : > { %p22_p10 = scmp.ge.s32.totalorder %s4844_s24, 6  }
 0xcda   : > { %s4848_s22 = smov %s4845_s4 }
 0xcdb   :  { %24 = sbr.rel (!%p22_p10) target bundleno = 13 (0xd), region = 163 }
 0xce0   :  { %2683 = vsyncpa [#allocation4], 1 }
 0xce1   :  { %2685 = vsyncpa [#allocation4 + $0x1], 1 }
 0xce2   :  { %2686 = vsyncpa [#allocation7], 1 }
 0xce3   :  { %2687 = vsyncpa [#allocation5], 1 }
 0xce4   :  { %2689 = vsyncpa [#allocation5 + $0x1], 1 }

</bundles_post_ra>
